<compile_context>
chip_gen: v7x
topology: tpu7x:2x2x1
jax: 0.10.0
libtpu: 0.0.40
codegen_flags: <defaults>
</compile_context>

<pallas_src>
import functools

import jax
import jax.numpy as jnp
from jax.experimental import pallas as pl
from jax.experimental.pallas import tpu as pltpu


# ---------------------------------------------------------------------------
# Kernel 1: grid = (M tiles [parallel], S tiles [arbitrary]).
#   * accumulates sum_S(x) for the mean-based write/erase gates
#   * one fused (B*tS, E) @ (E, 2*tM) bf16 matmul for the alloc+read logits
#   * batch-dim softmax (independent per (s, m) -> exact within a tile)
#   * accumulates write_template = transpose(alloc,1,2) @ x over S tiles
#   * emits the bf16 read gate r per tile; on the last S tile computes m_new
#     (f32) and a bf16 copy of m_new for the fetch pass
# ---------------------------------------------------------------------------
def _gates_update_kernel(x_ref, m_ref, w_ar_ref, b_ar_ref, w_we_ref, b_we_ref,
                         m_out_ref, r_out_ref, m_bf_out_ref,
                         xsum_ref, wt_ref, *, inv_seq):
    i = pl.program_id(1)                    # sequence tile (inner, arbitrary)
    nsteps = pl.num_programs(1)

    x = x_ref[...]                          # (B, tS, E) f32
    B, tS, E = x.shape
    tM2 = w_ar_ref.shape[1]
    tM = tM2 // 2

    @pl.when(i == 0)
    def _init():
        xsum_ref[...] = jnp.zeros_like(xsum_ref)
        wt_ref[...] = jnp.zeros_like(wt_ref)

    # Running sum over the sequence (for the mean-based w/e gates).
    xsum_ref[...] += jnp.sum(x, axis=1)

    # Fused alloc|read projection for this M tile: bf16 MXU, f32 accumulation.
    x_bf = x.astype(jnp.bfloat16)
    ar = jnp.dot(x_bf.reshape(B * tS, E), w_ar_ref[...],
                 preferred_element_type=jnp.float32)
    ar = ar.reshape(B, tS, tM2) + b_ar_ref[...]
    a_logits = ar[:, :, :tM]                # (B, tS, tM) alloc logits
    r_logits = ar[:, :, tM:]                # (B, tS, tM) read-gate logits

    # softmax over the batch dim (PyTorch dim=0), independent per (s, m).
    a_max = jnp.max(a_logits, axis=0, keepdims=True)
    a_exp = jnp.exp(a_logits - a_max)
    a_den = jnp.sum(a_exp, axis=0, keepdims=True)
    alloc = a_exp * pl.reciprocal(a_den, approx=True)   # divide on the EUP

    # write_template accumulation: transpose(alloc,1,2) @ x -> (B, tM, E).
    wt_ref[...] += jnp.einsum('bsm,bse->bme',
                              alloc.astype(jnp.bfloat16), x_bf,
                              preferred_element_type=jnp.float32)

    # Read gate for this (S tile, M tile): stored in bf16 (intermediate only).
    r_out_ref[...] = jax.nn.sigmoid(r_logits).astype(r_out_ref.dtype)

    @pl.when(i == nsteps - 1)
    def _finalize():
        # sigmoid(mean_S(x @ W + b)) == sigmoid(mean_S(x) @ W + b).
        # Tiny (B,E)@(E,2*tM) matmul -> keep it f32 for gate precision.
        x_mean = xsum_ref[...] * inv_seq                 # (B, E)
        gates = jax.nn.sigmoid(
            jnp.dot(x_mean, w_we_ref[...], preferred_element_type=jnp.float32)
            + b_we_ref[...])                             # (B, 2*tM)
        w_g = gates[:, :tM]
        e_g = gates[:, tM:]
        keep = (1.0 - w_g - e_g)[:, :, None]             # (B, tM, 1)
        m_new = keep * m_ref[...] + w_g[:, :, None] * wt_ref[...]
        m_out_ref[...] = m_new
        m_bf_out_ref[...] = m_new.astype(m_bf_out_ref.dtype)


# ---------------------------------------------------------------------------
# Kernel 2: x_fetch = r @ m_new, sequence-tiled, "parallel" across tiles.
#   m_new (bf16) stays resident in VMEM (constant block index, single buffer);
#   no per-iteration casts in the loop.
# ---------------------------------------------------------------------------
def _fetch_kernel(r_ref, m_ref, out_ref):
    out_ref[...] = jnp.einsum('bsm,bme->bse', r_ref[...], m_ref[...],
                              preferred_element_type=jnp.float32)


def _interleave_cols(a, b, n_t, t):
    """Pack column M-tiles of a and b side by side: tile j owns columns
    [j*2t : j*2t+t] (from a) and [j*2t+t : (j+1)*2t] (from b)."""
    lead = a.shape[0]
    return jnp.concatenate(
        [a.reshape(lead, n_t, t), b.reshape(lead, n_t, t)], axis=2
    ).reshape(lead, 2 * n_t * t)


def _vmem_limit_bytes():
    cap = 64 * 1024 * 1024
    try:
        cap = int(pltpu.get_tpu_info().vmem_capacity_bytes)
    except Exception:
        pass
    # Leave headroom for compiler-internal scratch and the double-buffered
    # x / r / x_fetch tiles: ~48 MiB on v7x, ~96 MiB on v5e/v6e.
    return max((cap * 3) // 4, 32 * 1024 * 1024)


def memory_gater(x, m, params, *, s_tile=None, s_tile_fetch=None, m_tile=None,
                 single_buffer_resident=True):
    """x: (B,S,E) f32, m: (B,M,E) f32; params: (E,M) weights, (1,M) biases.

    NOTE: m's HBM buffer is aliased to the m_new output inside the kernel;
    treat the m argument as consumed after this call.
    """
    B, S, E = x.shape
    Mdim = m.shape[1]

    if s_tile is None:
        s_tile = S if S <= 256 else 256
    assert S % s_tile == 0 and (s_tile % 8 == 0 or s_tile == S), \
        "kernel-1 sequence tile must divide S and be a multiple of 8 (or == S)"
    n_s = S // s_tile

    if s_tile_fetch is None:                    # fetch pass is memory-bound:
        s_tile_fetch = S if S <= 512 else 512   # bigger tiles, decoupled.
    assert S % s_tile_fetch == 0 and (s_tile_fetch % 8 == 0 or s_tile_fetch == S)
    n_sf = S // s_tile_fetch

    if m_tile is None:
        m_tile = 256 if (Mdim > 256 and Mdim % 256 == 0) else Mdim
    assert Mdim % m_tile == 0 and (m_tile % 128 == 0 or m_tile == Mdim), \
        "M tile must divide m_dim and be a multiple of 128 (or == m_dim)"
    n_m = Mdim // m_tile

    def spec(shape, index_map, *, resident=False):
        # Resident / slowly-varying blocks: single buffer (saves VMEM, no
        # perf cost).  Streaming blocks keep the default double buffering.
        if resident and single_buffer_resident:
            return pl.BlockSpec(shape, index_map, pipeline_mode=pl.Buffered(1))
        return pl.BlockSpec(shape, index_map)

    # Fused, per-M-tile-interleaved projection weights (one MXU pass per tile).
    # Big per-token projection in bf16; tiny mean-path projection stays f32.
    w_ar = _interleave_cols(params['wa'], params['wr'], n_m, m_tile).astype(jnp.bfloat16)
    b_ar = _interleave_cols(params['ba'], params['br'], n_m, m_tile)
    w_we = _interleave_cols(params['ww'], params['we'], n_m, m_tile)
    b_we = _interleave_cols(params['bw'], params['be'], n_m, m_tile)

    vmem_limit = _vmem_limit_bytes()

    cost1 = pl.CostEstimate(
        flops=2 * B * S * E * 2 * Mdim + 2 * B * S * Mdim * E
              + 2 * B * E * 2 * Mdim,
        transcendentals=2 * B * S * Mdim + 2 * B * Mdim,
        bytes_accessed=(4 * B * S * E * n_m          # x (re-read per M tile)
                        + 4 * B * Mdim * E           # m in
                        + 4 * B * Mdim * E           # m_new f32 out
                        + 2 * B * Mdim * E           # m_new bf16 out
                        + 2 * B * S * Mdim           # r bf16 out
                        + 2 * E * 2 * Mdim + 4 * E * 2 * Mdim + 6 * 2 * Mdim))

    m_new, r, m_bf = pl.pallas_call(
        functools.partial(_gates_update_kernel, inv_seq=1.0 / S),
        out_shape=(jax.ShapeDtypeStruct((B, Mdim, E), jnp.float32),
                   jax.ShapeDtypeStruct((B, S, Mdim), jnp.bfloat16),
                   jax.ShapeDtypeStruct((B, Mdim, E), jnp.bfloat16)),
        grid_spec=pltpu.PrefetchScalarGridSpec(
            num_scalar_prefetch=0,
            grid=(n_m, n_s),   # (M tiles: parallel, S tiles: arbitrary/carry)
            in_specs=[
                spec((B, s_tile, E), lambda j, i: (0, i, 0)),                  # x
                spec((B, m_tile, E), lambda j, i: (0, j, 0), resident=True),   # m
                spec((E, 2 * m_tile), lambda j, i: (0, j), resident=True),     # [Wa|Wr]_j
                spec((1, 2 * m_tile), lambda j, i: (0, j), resident=True),     # [ba|br]_j
                spec((E, 2 * m_tile), lambda j, i: (0, j), resident=True),     # [Ww|We]_j
                spec((1, 2 * m_tile), lambda j, i: (0, j), resident=True),     # [bw|be]_j
            ],
            out_specs=[
                spec((B, m_tile, E), lambda j, i: (0, j, 0), resident=True),   # m_new f32
                spec((B, s_tile, m_tile), lambda j, i: (0, i, j)),             # r bf16
                spec((B, m_tile, E), lambda j, i: (0, j, 0), resident=True),   # m_new bf16
            ],
            scratch_shapes=[
                pltpu.VMEM((B, E), jnp.float32),          # running sum_S(x)
                pltpu.VMEM((B, m_tile, E), jnp.float32),  # write_template accum
            ]),
        input_output_aliases={1: 0},      # reuse m's HBM buffer for m_new
        compiler_params=pltpu.CompilerParams(
            dimension_semantics=("parallel", "arbitrary"),
            vmem_limit_bytes=vmem_limit),
        cost_estimate=cost1,
    )(x, m, w_ar, b_ar, w_we, b_we)

    cost2 = pl.CostEstimate(
        flops=2 * B * S * Mdim * E,
        transcendentals=0,
        bytes_accessed=2 * B * S * Mdim + 2 * B * Mdim * E + 4 * B * S * E)

    x_fetch = pl.pallas_call(
        _fetch_kernel,
        out_shape=jax.ShapeDtypeStruct((B, S, E), jnp.float32),
        grid_spec=pltpu.PrefetchScalarGridSpec(
            num_scalar_prefetch=0,
            grid=(n_sf,),
            in_specs=[
                spec((B, s_tile_fetch, Mdim), lambda i: (0, i, 0)),            # r bf16
                spec((B, Mdim, E), lambda i: (0, 0, 0), resident=True),        # m_new bf16
            ],
            out_specs=pl.BlockSpec((B, s_tile_fetch, E), lambda i: (0, i, 0))),
        compiler_params=pltpu.CompilerParams(
            dimension_semantics=("parallel",),
            vmem_limit_bytes=vmem_limit),
        cost_estimate=cost2,
    )(r, m_bf)

    return m_new, x_fetch


def memory_gater_ref(x, m, p):
    """Pure-JAX f32 reference matching the PyTorch forward (eval mode)."""
    lin = lambda w, b: jnp.einsum('bse,em->bsm', x, w) + b
    w_g = jax.nn.sigmoid(jnp.mean(lin(p['ww'], p['bw']), axis=1))
    e_g = jax.nn.sigmoid(jnp.mean(lin(p['we'], p['be']), axis=1))
    alloc = jax.nn.softmax(lin(p['wa'], p['ba']), axis=0)
    write_template = jnp.einsum('bsm,bse->bme', alloc, x)
    m_new = (1.0 - w_g - e_g)[:, :, None] * m + w_g[:, :, None] * write_template
    r = jax.nn.sigmoid(lin(p['wr'], p['br']))
    x_fetch = jnp.einsum('bsm,bme->bse', r, m_new)
    return m_new, x_fetch


if __name__ == "__main__":
    B, S, E, M = 2, 64, 32, 16   # batch, seq, emb_dim, m_dim (small test shapes)

    key = jax.random.PRNGKey(0)
    keys = jax.random.split(key, 10)

    x = jax.random.normal(keys[0], (B, S, E), dtype=jnp.float32)
    m = jax.random.normal(keys[1], (B, M, E), dtype=jnp.float32)

    # Deterministic Linear(emb_dim, m_dim) init: weight (E, M), bias (1, M).
    scale = 1.0 / jnp.sqrt(jnp.float32(E))
    params = {
        'ww': jax.random.uniform(keys[2], (E, M), jnp.float32, -scale, scale),
        'bw': jax.random.uniform(keys[3], (1, M), jnp.float32, -scale, scale),
        'we': jax.random.uniform(keys[4], (E, M), jnp.float32, -scale, scale),
        'be': jax.random.uniform(keys[5], (1, M), jnp.float32, -scale, scale),
        'wr': jax.random.uniform(keys[6], (E, M), jnp.float32, -scale, scale),
        'br': jax.random.uniform(keys[7], (1, M), jnp.float32, -scale, scale),
        'wa': jax.random.uniform(keys[8], (E, M), jnp.float32, -scale, scale),
        'ba': jax.random.uniform(keys[9], (1, M), jnp.float32, -scale, scale),
    }

    # 4 sequence tiles in the gating pass, 2 in the fetch pass (exercises both
    # grids, the carried accumulators, and the decoupled fetch tile size).
    def make_run(single_buffer):
        return jax.jit(functools.partial(
            memory_gater, s_tile=16, s_tile_fetch=32,
            single_buffer_resident=single_buffer))

    try:
        m_new, x_fetch = make_run(True)(x, m, params)
    except Exception:
        # Fallback for jax versions that reject single-buffered resident
        # blocks (pipeline_mode=pl.Buffered(1)); identical math otherwise.
        m_new, x_fetch = make_run(False)(x, m, params)
    jax.block_until_ready((m_new, x_fetch))

    m_ref, f_ref = memory_gater_ref(x, m, params)

    # bf16 MXU operands + bf16 r / m_new intermediates (f32 accumulation):
    # use normalized-error checks instead of tight elementwise allclose.
    def max_rel_err(a, b):
        a = a.astype(jnp.float32)
        return float(jnp.max(jnp.abs(a - b)) / (jnp.max(jnp.abs(b)) + 1e-6))

    assert max_rel_err(m_new, m_ref) < 2e-2, "memory mismatch"
    assert max_rel_err(x_fetch, f_ref) < 3e-2, "fetch mismatch"

    print("KERNEL_OK")
</pallas_src>

<mosaic_0001>
module attributes {stable_mosaic.version = 11 : i64} {
  func.func @_fetch_kernel(%arg0: i32, %arg1: memref<2x32x16xbf16, #tpu.memory_space<vmem>>, %arg2: memref<2x16x32xbf16, #tpu.memory_space<vmem>>, %arg3: memref<2x32x32xf32, #tpu.memory_space<vmem>>) attributes {dimension_semantics = [#tpu.dimension_semantics<parallel>], iteration_bounds = array<i64: 2>, scalar_prefetch = 0 : i64, scratch_operands = 0 : i64, tpu.core_type = #tpu.core_type<tc>, window_params = [{transform_indices = @transform_0, window_bounds = array<i64: 2, 32, 16>}, {pipeline_mode = #tpu.pipeline_mode<synchronous>, transform_indices = @transform_1, window_bounds = array<i64: 2, 16, 32>}, {transform_indices = @transform_2, window_bounds = array<i64: 2, 32, 32>}]} {
    %c0 = arith.constant 0 : index
    %c0_0 = arith.constant 0 : index
    %c0_1 = arith.constant 0 : index
    %0 = vector.load %arg1[%c0, %c0_0, %c0_1] : memref<2x32x16xbf16, #tpu.memory_space<vmem>>, vector<2x32x16xbf16>
    %c0_2 = arith.constant 0 : index
    %c0_3 = arith.constant 0 : index
    %c0_4 = arith.constant 0 : index
    %1 = vector.load %arg2[%c0_2, %c0_3, %c0_4] : memref<2x16x32xbf16, #tpu.memory_space<vmem>>, vector<2x16x32xbf16>
    "tpu.trace_start"() <{level = 10 : i32, message = "bsm,bme->bse"}> : () -> ()
    %cst = arith.constant dense<0.000000e+00> : vector<2x32x32xf32>
    %2 = tpu.matmul %0, %1, %cst {dimension_numbers = #tpu.dot_dimension_numbers<[2], [1], [1], [2], [0, 0, 0, 1, 1, 2], [0], [0]>} : vector<2x32x16xbf16>, vector<2x16x32xbf16>, vector<2x32x32xf32> -> vector<2x32x32xf32>
    "tpu.trace_stop"() : () -> ()
    %c0_5 = arith.constant 0 : index
    %c0_6 = arith.constant 0 : index
    %c0_7 = arith.constant 0 : index
    %3 = vector.load %arg3[%c0_5, %c0_6, %c0_7] : memref<2x32x32xf32, #tpu.memory_space<vmem>>, vector<2x32x32xf32>
    tpu.vector_store %arg3[%c0_5, %c0_6, %c0_7], %2 {strides = array<i32>} : memref<2x32x32xf32, #tpu.memory_space<vmem>>, vector<2x32x32xf32>,
    return
  }
  func.func @transform_0(%arg0: i32) -> (i32, i32, i32) {
    %c0_i32 = arith.constant 0 : i32
    %c0_i32_0 = arith.constant 0 : i32
    %c0_i32_1 = arith.constant 0 : i32
    return %c0_i32, %arg0, %c0_i32_0 : i32, i32, i32
  }
  func.func @transform_1(%arg0: i32) -> (i32, i32, i32) {
    %c0_i32 = arith.constant 0 : i32
    %c0_i32_0 = arith.constant 0 : i32
    %c0_i32_1 = arith.constant 0 : i32
    %c0_i32_2 = arith.constant 0 : i32
    return %c0_i32, %c0_i32_0, %c0_i32_1 : i32, i32, i32
  }
  func.func @transform_2(%arg0: i32) -> (i32, i32, i32) {
    %c0_i32 = arith.constant 0 : i32
    %c0_i32_0 = arith.constant 0 : i32
    %c0_i32_1 = arith.constant 0 : i32
    return %c0_i32, %arg0, %c0_i32_0 : i32, i32, i32
  }
}

module attributes {stable_mosaic.version = 11 : i64} {
  func.func @_gates_update_kernel(%arg0: i32, %arg1: i32, %arg2: memref<2x16x32xf32, #tpu.memory_space<vmem>>, %arg3: memref<2x16x32xf32, #tpu.memory_space<vmem>>, %arg4: memref<32x32xbf16, #tpu.memory_space<vmem>>, %arg5: memref<1x32xf32, #tpu.memory_space<vmem>>, %arg6: memref<32x32xf32, #tpu.memory_space<vmem>>, %arg7: memref<1x32xf32, #tpu.memory_space<vmem>>, %arg8: memref<2x16x32xf32, #tpu.memory_space<vmem>>, %arg9: memref<2x16x16xbf16, #tpu.memory_space<vmem>>, %arg10: memref<2x16x32xbf16, #tpu.memory_space<vmem>>, %arg11: memref<2x32xf32, #tpu.memory_space<vmem>>, %arg12: memref<2x16x32xf32, #tpu.memory_space<vmem>>) attributes {dimension_semantics = [#tpu.dimension_semantics<parallel>, #tpu.dimension_semantics<arbitrary>], iteration_bounds = array<i64: 1, 4>, scalar_prefetch = 0 : i64, scratch_operands = 2 : i64, tpu.core_type = #tpu.core_type<tc>, window_params = [{transform_indices = @transform_0, window_bounds = array<i64: 2, 16, 32>}, {pipeline_mode = #tpu.pipeline_mode<synchronous>, transform_indices = @transform_1, window_bounds = array<i64: 2, 16, 32>}, {pipeline_mode = #tpu.pipeline_mode<synchronous>, transform_indices = @transform_2, window_bounds = array<i64: 32, 32>}, {pipeline_mode = #tpu.pipeline_mode<synchronous>, transform_indices = @transform_3, window_bounds = array<i64: 1, 32>}, {pipeline_mode = #tpu.pipeline_mode<synchronous>, transform_indices = @transform_4, window_bounds = array<i64: 32, 32>}, {pipeline_mode = #tpu.pipeline_mode<synchronous>, transform_indices = @transform_5, window_bounds = array<i64: 1, 32>}, {pipeline_mode = #tpu.pipeline_mode<synchronous>, transform_indices = @transform_6, window_bounds = array<i64: 2, 16, 32>}, {transform_indices = @transform_7, window_bounds = array<i64: 2, 16, 16>}, {pipeline_mode = #tpu.pipeline_mode<synchronous>, transform_indices = @transform_8, window_bounds = array<i64: 2, 16, 32>}]} {
    %c0 = arith.constant 0 : index
    %c0_0 = arith.constant 0 : index
    %c0_1 = arith.constant 0 : index
    %0 = vector.load %arg2[%c0, %c0_0, %c0_1] : memref<2x16x32xf32, #tpu.memory_space<vmem>>, vector<2x16x32xf32>
    %c0_i32 = arith.constant 0 : i32
    %1 = arith.cmpi eq, %arg1, %c0_i32 : i32
    %2 = arith.extui %1 : i1 to i32
    %c0_i32_2 = arith.constant 0 : i32
    %3 = arith.cmpi ne, %2, %c0_i32_2 : i32
    scf.if %3 {
      %cst_26 = arith.constant 0.000000e+00 : f32
      %44 = vector.broadcast %cst_26 : f32 to vector<2x32xf32>
      %c0_27 = arith.constant 0 : index
      %c0_28 = arith.constant 0 : index
      %45 = vector.load %arg11[%c0_27, %c0_28] : memref<2x32xf32, #tpu.memory_space<vmem>>, vector<2x32xf32>
      tpu.vector_store %arg11[%c0_27, %c0_28], %44 {strides = array<i32>} : memref<2x32xf32, #tpu.memory_space<vmem>>, vector<2x32xf32>,
      %cst_29 = arith.constant 0.000000e+00 : f32
      %46 = vector.broadcast %cst_29 : f32 to vector<2x16x32xf32>
      %c0_30 = arith.constant 0 : index
      %c0_31 = arith.constant 0 : index
      %c0_32 = arith.constant 0 : index
      %47 = vector.load %arg12[%c0_30, %c0_31, %c0_32] : memref<2x16x32xf32, #tpu.memory_space<vmem>>, vector<2x16x32xf32>
      tpu.vector_store %arg12[%c0_30, %c0_31, %c0_32], %46 {strides = array<i32>} : memref<2x16x32xf32, #tpu.memory_space<vmem>>, vector<2x16x32xf32>,
    } else {
    }
    %c0_3 = arith.constant 0 : index
    %c0_4 = arith.constant 0 : index
    %4 = vector.load %arg11[%c0_3, %c0_4] : memref<2x32xf32, #tpu.memory_space<vmem>>, vector<2x32xf32>
    %cst = arith.constant dense<0.000000e+00> : vector<2x32xf32>
    %5 = vector.multi_reduction <add>, %0, %cst [1] : vector<2x16x32xf32> to vector<2x32xf32>
    %6 = arith.addf %4, %5 : vector<2x32xf32>
    %c0_5 = arith.constant 0 : index
    %c0_6 = arith.constant 0 : index
    %7 = vector.load %arg11[%c0_5, %c0_6] : memref<2x32xf32, #tpu.memory_space<vmem>>, vector<2x32xf32>
    tpu.vector_store %arg11[%c0_5, %c0_6], %6 {strides = array<i32>} : memref<2x32xf32, #tpu.memory_space<vmem>>, vector<2x32xf32>,
    %8 = arith.truncf %0 : vector<2x16x32xf32> to vector<2x16x32xbf16>
    %9 = vector.shape_cast %8 : vector<2x16x32xbf16> to vector<32x32xbf16>
    %c0_7 = arith.constant 0 : index
    %c0_8 = arith.constant 0 : index
    %10 = vector.load %arg4[%c0_7, %c0_8] : memref<32x32xbf16, #tpu.memory_space<vmem>>, vector<32x32xbf16>
    %cst_9 = arith.constant dense<0.000000e+00> : vector<32x32xf32>
    %11 = tpu.matmul %9, %10, %cst_9 {dimension_numbers = #tpu.dot_dimension_numbers<[1], [0], [0], [1], [0, 0, 1, 1], [], []>} : vector<32x32xbf16>, vector<32x32xbf16>, vector<32x32xf32> -> vector<32x32xf32>
    %12 = vector.shape_cast %11 : vector<32x32xf32> to vector<2x16x32xf32>
    %c0_10 = arith.constant 0 : index
    %c0_11 = arith.constant 0 : index
    %13 = vector.load %arg5[%c0_10, %c0_11] : memref<1x32xf32, #tpu.memory_space<vmem>>, vector<1x32xf32>
    %14 = vector.shape_cast %13 : vector<1x32xf32> to vector<1x1x32xf32>
    %15 = vector.broadcast %14 : vector<1x1x32xf32> to vector<2x16x32xf32>
    %16 = arith.addf %12, %15 : vector<2x16x32xf32>
    %17 = vector.extract_strided_slice %16 {offsets = [0, 0, 0], sizes = [2, 16, 16], strides = [1, 1, 1]} : vector<2x16x32xf32> to vector<2x16x16xf32>
    %18 = vector.extract_strided_slice %16 {offsets = [0, 0, 16], sizes = [2, 16, 16], strides = [1, 1, 1]} : vector<2x16x32xf32> to vector<2x16x16xf32>
    %cst_12 = arith.constant dense<0xFF800000> : vector<16x16xf32>
    %19 = vector.multi_reduction <maximumf>, %17, %cst_12 [0] : vector<2x16x16xf32> to vector<16x16xf32>
    %20 = vector.shape_cast %19 : vector<16x16xf32> to vector<1x16x16xf32>
    %21 = vector.broadcast %20 : vector<1x16x16xf32> to vector<2x16x16xf32>
    %22 = arith.subf %17, %21 : vector<2x16x16xf32>
    %23 = math.exp %22 : vector<2x16x16xf32>
    %cst_13 = arith.constant dense<0.000000e+00> : vector<16x16xf32>
    %24 = vector.multi_reduction <add>, %23, %cst_13 [0] : vector<2x16x16xf32> to vector<16x16xf32>
    %25 = vector.shape_cast %24 : vector<16x16xf32> to vector<1x16x16xf32>
    %26 = tpu.reciprocal %25 {approx = true} : vector<1x16x16xf32> -> vector<1x16x16xf32>
    %27 = vector.broadcast %26 : vector<1x16x16xf32> to vector<2x16x16xf32>
    %28 = arith.mulf %23, %27 : vector<2x16x16xf32>
    %c0_14 = arith.constant 0 : index
    %c0_15 = arith.constant 0 : index
    %c0_16 = arith.constant 0 : index
    %29 = vector.load %arg12[%c0_14, %c0_15, %c0_16] : memref<2x16x32xf32, #tpu.memory_space<vmem>>, vector<2x16x32xf32>
    %30 = arith.truncf %28 : vector<2x16x16xf32> to vector<2x16x16xbf16>
    "tpu.trace_start"() <{level = 10 : i32, message = "bsm,bse->bme"}> : () -> ()
    %cst_17 = arith.constant dense<0.000000e+00> : vector<2x16x32xf32>
    %31 = tpu.matmul %30, %8, %cst_17 {dimension_numbers = #tpu.dot_dimension_numbers<[1], [1], [2], [2], [0, 0, 0, 2, 1, 2], [0], [0]>} : vector<2x16x16xbf16>, vector<2x16x32xbf16>, vector<2x16x32xf32> -> vector<2x16x32xf32>
    "tpu.trace_stop"() : () -> ()
    %32 = arith.addf %29, %31 : vector<2x16x32xf32>
    %c0_18 = arith.constant 0 : index
    %c0_19 = arith.constant 0 : index
    %c0_20 = arith.constant 0 : index
    %33 = vector.load %arg12[%c0_18, %c0_19, %c0_20] : memref<2x16x32xf32, #tpu.memory_space<vmem>>, vector<2x16x32xf32>
    tpu.vector_store %arg12[%c0_18, %c0_19, %c0_20], %32 {strides = array<i32>} : memref<2x16x32xf32, #tpu.memory_space<vmem>>, vector<2x16x32xf32>,
    %34 = arith.negf %18 : vector<2x16x16xf32>
    %35 = math.exp %34 : vector<2x16x16xf32>
    %cst_21 = arith.constant 1.000000e+00 : f32
    %36 = vector.broadcast %cst_21 : f32 to vector<2x16x16xf32>
    %37 = arith.addf %36, %35 : vector<2x16x16xf32>
    %38 = arith.divf %36, %37 : vector<2x16x16xf32>
    %39 = arith.truncf %38 : vector<2x16x16xf32> to vector<2x16x16xbf16>
    %c0_22 = arith.constant 0 : index
    %c0_23 = arith.constant 0 : index
    %c0_24 = arith.constant 0 : index
    %40 = vector.load %arg9[%c0_22, %c0_23, %c0_24] : memref<2x16x16xbf16, #tpu.memory_space<vmem>>, vector<2x16x16xbf16>
    tpu.vector_store %arg9[%c0_22, %c0_23, %c0_24], %39 {strides = array<i32>} : memref<2x16x16xbf16, #tpu.memory_space<vmem>>, vector<2x16x16xbf16>,
    %c3_i32 = arith.constant 3 : i32
    %41 = arith.cmpi eq, %arg1, %c3_i32 : i32
    %42 = arith.extui %41 : i1 to i32
    %c0_i32_25 = arith.constant 0 : i32
    %43 = arith.cmpi ne, %42, %c0_i32_25 : i32
    scf.if %43 {
      %c0_26 = arith.constant 0 : index
      %c0_27 = arith.constant 0 : index
      %44 = vector.load %arg11[%c0_26, %c0_27] : memref<2x32xf32, #tpu.memory_space<vmem>>, vector<2x32xf32>
      %cst_28 = arith.constant 1.562500e-02 : f32
      %45 = vector.broadcast %cst_28 : f32 to vector<2x32xf32>
      %46 = arith.mulf %44, %45 : vector<2x32xf32>
      %c0_29 = arith.constant 0 : index
      %c0_30 = arith.constant 0 : index
      %47 = vector.load %arg6[%c0_29, %c0_30] : memref<32x32xf32, #tpu.memory_space<vmem>>, vector<32x32xf32>
      %cst_31 = arith.constant dense<0.000000e+00> : vector<2x32xf32>
      %48 = tpu.matmul %46, %47, %cst_31 {dimension_numbers = #tpu.dot_dimension_numbers<[1], [0], [0], [1], [0, 0, 1, 1], [], []>} : vector<2x32xf32>, vector<32x32xf32>, vector<2x32xf32> -> vector<2x32xf32>
      %c0_32 = arith.constant 0 : index
      %c0_33 = arith.constant 0 : index
      %49 = vector.load %arg7[%c0_32, %c0_33] : memref<1x32xf32, #tpu.memory_space<vmem>>, vector<1x32xf32>
      %50 = vector.broadcast %49 : vector<1x32xf32> to vector<2x32xf32>
      %51 = arith.addf %48, %50 : vector<2x32xf32>
      %52 = arith.negf %51 : vector<2x32xf32>
      %53 = math.exp %52 : vector<2x32xf32>
      %cst_34 = arith.constant 1.000000e+00 : f32
      %54 = vector.broadcast %cst_34 : f32 to vector<2x32xf32>
      %55 = arith.addf %54, %53 : vector<2x32xf32>
      %56 = arith.divf %54, %55 : vector<2x32xf32>
      %57 = vector.extract_strided_slice %56 {offsets = [0, 0], sizes = [2, 16], strides = [1, 1]} : vector<2x32xf32> to vector<2x16xf32>
      %58 = vector.extract_strided_slice %56 {offsets = [0, 16], sizes = [2, 16], strides = [1, 1]} : vector<2x32xf32> to vector<2x16xf32>
      %cst_35 = arith.constant 1.000000e+00 : f32
      %59 = vector.broadcast %cst_35 : f32 to vector<2x16xf32>
      %60 = arith.subf %59, %57 : vector<2x16xf32>
      %61 = arith.subf %60, %58 : vector<2x16xf32>
      %62 = vector.shape_cast %61 : vector<2x16xf32> to vector<2x16x1xf32>
      %c0_36 = arith.constant 0 : index
      %c0_37 = arith.constant 0 : index
      %c0_38 = arith.constant 0 : index
      %63 = vector.load %arg3[%c0_36, %c0_37, %c0_38] : memref<2x16x32xf32, #tpu.memory_space<vmem>>, vector<2x16x32xf32>
      %64 = vector.broadcast %62 : vector<2x16x1xf32> to vector<2x16x32xf32>
      %65 = arith.mulf %64, %63 : vector<2x16x32xf32>
      %66 = vector.shape_cast %57 : vector<2x16xf32> to vector<2x16x1xf32>
      %c0_39 = arith.constant 0 : index
      %c0_40 = arith.constant 0 : index
      %c0_41 = arith.constant 0 : index
      %67 = vector.load %arg12[%c0_39, %c0_40, %c0_41] : memref<2x16x32xf32, #tpu.memory_space<vmem>>, vector<2x16x32xf32>
      %68 = vector.broadcast %66 : vector<2x16x1xf32> to vector<2x16x32xf32>
      %69 = arith.mulf %68, %67 : vector<2x16x32xf32>
      %70 = arith.addf %65, %69 : vector<2x16x32xf32>
      %c0_42 = arith.constant 0 : index
      %c0_43 = arith.constant 0 : index
      %c0_44 = arith.constant 0 : index
      %71 = vector.load %arg8[%c0_42, %c0_43, %c0_44] : memref<2x16x32xf32, #tpu.memory_space<vmem>>, vector<2x16x32xf32>
      tpu.vector_store %arg8[%c0_42, %c0_43, %c0_44], %70 {strides = array<i32>} : memref<2x16x32xf32, #tpu.memory_space<vmem>>, vector<2x16x32xf32>,
      %72 = arith.truncf %70 : vector<2x16x32xf32> to vector<2x16x32xbf16>
      %c0_45 = arith.constant 0 : index
      %c0_46 = arith.constant 0 : index
      %c0_47 = arith.constant 0 : index
      %73 = vector.load %arg10[%c0_45, %c0_46, %c0_47] : memref<2x16x32xbf16, #tpu.memory_space<vmem>>, vector<2x16x32xbf16>
      tpu.vector_store %arg10[%c0_45, %c0_46, %c0_47], %72 {strides = array<i32>} : memref<2x16x32xbf16, #tpu.memory_space<vmem>>, vector<2x16x32xbf16>,
    } else {
    }
    return
  }
  func.func @transform_0(%arg0: i32, %arg1: i32) -> (i32, i32, i32) {
    %c0_i32 = arith.constant 0 : i32
    %c0_i32_0 = arith.constant 0 : i32
    %c0_i32_1 = arith.constant 0 : i32
    return %c0_i32, %arg1, %c0_i32_0 : i32, i32, i32
  }
  func.func @transform_1(%arg0: i32, %arg1: i32) -> (i32, i32, i32) {
    %c0_i32 = arith.constant 0 : i32
    %c0_i32_0 = arith.constant 0 : i32
    %c0_i32_1 = arith.constant 0 : i32
    return %c0_i32, %arg0, %c0_i32_0 : i32, i32, i32
  }
  func.func @transform_2(%arg0: i32, %arg1: i32) -> (i32, i32) {
    %c0_i32 = arith.constant 0 : i32
    %c0_i32_0 = arith.constant 0 : i32
    return %c0_i32, %arg0 : i32, i32
  }
  func.func @transform_3(%arg0: i32, %arg1: i32) -> (i32, i32) {
    %c0_i32 = arith.constant 0 : i32
    %c0_i32_0 = arith.constant 0 : i32
    return %c0_i32, %arg0 : i32, i32
  }
  func.func @transform_4(%arg0: i32, %arg1: i32) -> (i32, i32) {
    %c0_i32 = arith.constant 0 : i32
    %c0_i32_0 = arith.constant 0 : i32
    return %c0_i32, %arg0 : i32, i32
  }
  func.func @transform_5(%arg0: i32, %arg1: i32) -> (i32, i32) {
    %c0_i32 = arith.constant 0 : i32
    %c0_i32_0 = arith.constant 0 : i32
    return %c0_i32, %arg0 : i32, i32
  }
  func.func @transform_6(%arg0: i32, %arg1: i32) -> (i32, i32, i32) {
    %c0_i32 = arith.constant 0 : i32
    %c0_i32_0 = arith.constant 0 : i32
    %c0_i32_1 = arith.constant 0 : i32
    return %c0_i32, %arg0, %c0_i32_0 : i32, i32, i32
  }
  func.func @transform_7(%arg0: i32, %arg1: i32) -> (i32, i32, i32) {
    %c0_i32 = arith.constant 0 : i32
    %c0_i32_0 = arith.constant 0 : i32
    return %c0_i32, %arg1, %arg0 : i32, i32, i32
  }
  func.func @transform_8(%arg0: i32, %arg1: i32) -> (i32, i32, i32) {
    %c0_i32 = arith.constant 0 : i32
    %c0_i32_0 = arith.constant 0 : i32
    %c0_i32_1 = arith.constant 0 : i32
    return %c0_i32, %arg0, %c0_i32_0 : i32, i32, i32
  }
}

module attributes {stable_mosaic.version = 11 : i64} {
  func.func @_gates_update_kernel(%arg0: i32, %arg1: i32, %arg2: memref<2x16x32xf32, #tpu.memory_space<vmem>>, %arg3: memref<2x16x32xf32, #tpu.memory_space<vmem>>, %arg4: memref<32x32xbf16, #tpu.memory_space<vmem>>, %arg5: memref<1x32xf32, #tpu.memory_space<vmem>>, %arg6: memref<32x32xf32, #tpu.memory_space<vmem>>, %arg7: memref<1x32xf32, #tpu.memory_space<vmem>>, %arg8: memref<2x16x32xf32, #tpu.memory_space<vmem>>, %arg9: memref<2x16x16xbf16, #tpu.memory_space<vmem>>, %arg10: memref<2x16x32xbf16, #tpu.memory_space<vmem>>, %arg11: memref<2x32xf32, #tpu.memory_space<vmem>>, %arg12: memref<2x16x32xf32, #tpu.memory_space<vmem>>) attributes {dimension_semantics = [#tpu.dimension_semantics<parallel>, #tpu.dimension_semantics<arbitrary>], iteration_bounds = array<i64: 1, 4>, scalar_prefetch = 0 : i64, scratch_operands = 2 : i64, tpu.core_type = #tpu.core_type<tc>, window_params = [{transform_indices = @transform_0, window_bounds = array<i64: 2, 16, 32>}, {transform_indices = @transform_1, window_bounds = array<i64: 2, 16, 32>}, {transform_indices = @transform_2, window_bounds = array<i64: 32, 32>}, {transform_indices = @transform_3, window_bounds = array<i64: 1, 32>}, {transform_indices = @transform_4, window_bounds = array<i64: 32, 32>}, {transform_indices = @transform_5, window_bounds = array<i64: 1, 32>}, {transform_indices = @transform_6, window_bounds = array<i64: 2, 16, 32>}, {transform_indices = @transform_7, window_bounds = array<i64: 2, 16, 16>}, {transform_indices = @transform_8, window_bounds = array<i64: 2, 16, 32>}]} {
    %c0 = arith.constant 0 : index
    %c0_0 = arith.constant 0 : index
    %c0_1 = arith.constant 0 : index
    %0 = vector.load %arg2[%c0, %c0_0, %c0_1] : memref<2x16x32xf32, #tpu.memory_space<vmem>>, vector<2x16x32xf32>
    %c0_i32 = arith.constant 0 : i32
    %1 = arith.cmpi eq, %arg1, %c0_i32 : i32
    %2 = arith.extui %1 : i1 to i32
    %c0_i32_2 = arith.constant 0 : i32
    %3 = arith.cmpi ne, %2, %c0_i32_2 : i32
    scf.if %3 {
      %cst_26 = arith.constant 0.000000e+00 : f32
      %44 = vector.broadcast %cst_26 : f32 to vector<2x32xf32>
      %c0_27 = arith.constant 0 : index
      %c0_28 = arith.constant 0 : index
      %45 = vector.load %arg11[%c0_27, %c0_28] : memref<2x32xf32, #tpu.memory_space<vmem>>, vector<2x32xf32>
      tpu.vector_store %arg11[%c0_27, %c0_28], %44 {strides = array<i32>} : memref<2x32xf32, #tpu.memory_space<vmem>>, vector<2x32xf32>,
      %cst_29 = arith.constant 0.000000e+00 : f32
      %46 = vector.broadcast %cst_29 : f32 to vector<2x16x32xf32>
      %c0_30 = arith.constant 0 : index
      %c0_31 = arith.constant 0 : index
      %c0_32 = arith.constant 0 : index
      %47 = vector.load %arg12[%c0_30, %c0_31, %c0_32] : memref<2x16x32xf32, #tpu.memory_space<vmem>>, vector<2x16x32xf32>
      tpu.vector_store %arg12[%c0_30, %c0_31, %c0_32], %46 {strides = array<i32>} : memref<2x16x32xf32, #tpu.memory_space<vmem>>, vector<2x16x32xf32>,
    } else {
    }
    %c0_3 = arith.constant 0 : index
    %c0_4 = arith.constant 0 : index
    %4 = vector.load %arg11[%c0_3, %c0_4] : memref<2x32xf32, #tpu.memory_space<vmem>>, vector<2x32xf32>
    %cst = arith.constant dense<0.000000e+00> : vector<2x32xf32>
    %5 = vector.multi_reduction <add>, %0, %cst [1] : vector<2x16x32xf32> to vector<2x32xf32>
    %6 = arith.addf %4, %5 : vector<2x32xf32>
    %c0_5 = arith.constant 0 : index
    %c0_6 = arith.constant 0 : index
    %7 = vector.load %arg11[%c0_5, %c0_6] : memref<2x32xf32, #tpu.memory_space<vmem>>, vector<2x32xf32>
    tpu.vector_store %arg11[%c0_5, %c0_6], %6 {strides = array<i32>} : memref<2x32xf32, #tpu.memory_space<vmem>>, vector<2x32xf32>,
    %8 = arith.truncf %0 : vector<2x16x32xf32> to vector<2x16x32xbf16>
    %9 = vector.shape_cast %8 : vector<2x16x32xbf16> to vector<32x32xbf16>
    %c0_7 = arith.constant 0 : index
    %c0_8 = arith.constant 0 : index
    %10 = vector.load %arg4[%c0_7, %c0_8] : memref<32x32xbf16, #tpu.memory_space<vmem>>, vector<32x32xbf16>
    %cst_9 = arith.constant dense<0.000000e+00> : vector<32x32xf32>
    %11 = tpu.matmul %9, %10, %cst_9 {dimension_numbers = #tpu.dot_dimension_numbers<[1], [0], [0], [1], [0, 0, 1, 1], [], []>} : vector<32x32xbf16>, vector<32x32xbf16>, vector<32x32xf32> -> vector<32x32xf32>
    %12 = vector.shape_cast %11 : vector<32x32xf32> to vector<2x16x32xf32>
    %c0_10 = arith.constant 0 : index
    %c0_11 = arith.constant 0 : index
    %13 = vector.load %arg5[%c0_10, %c0_11] : memref<1x32xf32, #tpu.memory_space<vmem>>, vector<1x32xf32>
    %14 = vector.shape_cast %13 : vector<1x32xf32> to vector<1x1x32xf32>
    %15 = vector.broadcast %14 : vector<1x1x32xf32> to vector<2x16x32xf32>
    %16 = arith.addf %12, %15 : vector<2x16x32xf32>
    %17 = vector.extract_strided_slice %16 {offsets = [0, 0, 0], sizes = [2, 16, 16], strides = [1, 1, 1]} : vector<2x16x32xf32> to vector<2x16x16xf32>
    %18 = vector.extract_strided_slice %16 {offsets = [0, 0, 16], sizes = [2, 16, 16], strides = [1, 1, 1]} : vector<2x16x32xf32> to vector<2x16x16xf32>
    %cst_12 = arith.constant dense<0xFF800000> : vector<16x16xf32>
    %19 = vector.multi_reduction <maximumf>, %17, %cst_12 [0] : vector<2x16x16xf32> to vector<16x16xf32>
    %20 = vector.shape_cast %19 : vector<16x16xf32> to vector<1x16x16xf32>
    %21 = vector.broadcast %20 : vector<1x16x16xf32> to vector<2x16x16xf32>
    %22 = arith.subf %17, %21 : vector<2x16x16xf32>
    %23 = math.exp %22 : vector<2x16x16xf32>
    %cst_13 = arith.constant dense<0.000000e+00> : vector<16x16xf32>
    %24 = vector.multi_reduction <add>, %23, %cst_13 [0] : vector<2x16x16xf32> to vector<16x16xf32>
    %25 = vector.shape_cast %24 : vector<16x16xf32> to vector<1x16x16xf32>
    %26 = tpu.reciprocal %25 {approx = true} : vector<1x16x16xf32> -> vector<1x16x16xf32>
    %27 = vector.broadcast %26 : vector<1x16x16xf32> to vector<2x16x16xf32>
    %28 = arith.mulf %23, %27 : vector<2x16x16xf32>
    %c0_14 = arith.constant 0 : index
    %c0_15 = arith.constant 0 : index
    %c0_16 = arith.constant 0 : index
    %29 = vector.load %arg12[%c0_14, %c0_15, %c0_16] : memref<2x16x32xf32, #tpu.memory_space<vmem>>, vector<2x16x32xf32>
    %30 = arith.truncf %28 : vector<2x16x16xf32> to vector<2x16x16xbf16>
    "tpu.trace_start"() <{level = 10 : i32, message = "bsm,bse->bme"}> : () -> ()
    %cst_17 = arith.constant dense<0.000000e+00> : vector<2x16x32xf32>
    %31 = tpu.matmul %30, %8, %cst_17 {dimension_numbers = #tpu.dot_dimension_numbers<[1], [1], [2], [2], [0, 0, 0, 2, 1, 2], [0], [0]>} : vector<2x16x16xbf16>, vector<2x16x32xbf16>, vector<2x16x32xf32> -> vector<2x16x32xf32>
    "tpu.trace_stop"() : () -> ()
    %32 = arith.addf %29, %31 : vector<2x16x32xf32>
    %c0_18 = arith.constant 0 : index
    %c0_19 = arith.constant 0 : index
    %c0_20 = arith.constant 0 : index
    %33 = vector.load %arg12[%c0_18, %c0_19, %c0_20] : memref<2x16x32xf32, #tpu.memory_space<vmem>>, vector<2x16x32xf32>
    tpu.vector_store %arg12[%c0_18, %c0_19, %c0_20], %32 {strides = array<i32>} : memref<2x16x32xf32, #tpu.memory_space<vmem>>, vector<2x16x32xf32>,
    %34 = arith.negf %18 : vector<2x16x16xf32>
    %35 = math.exp %34 : vector<2x16x16xf32>
    %cst_21 = arith.constant 1.000000e+00 : f32
    %36 = vector.broadcast %cst_21 : f32 to vector<2x16x16xf32>
    %37 = arith.addf %36, %35 : vector<2x16x16xf32>
    %38 = arith.divf %36, %37 : vector<2x16x16xf32>
    %39 = arith.truncf %38 : vector<2x16x16xf32> to vector<2x16x16xbf16>
    %c0_22 = arith.constant 0 : index
    %c0_23 = arith.constant 0 : index
    %c0_24 = arith.constant 0 : index
    %40 = vector.load %arg9[%c0_22, %c0_23, %c0_24] : memref<2x16x16xbf16, #tpu.memory_space<vmem>>, vector<2x16x16xbf16>
    tpu.vector_store %arg9[%c0_22, %c0_23, %c0_24], %39 {strides = array<i32>} : memref<2x16x16xbf16, #tpu.memory_space<vmem>>, vector<2x16x16xbf16>,
    %c3_i32 = arith.constant 3 : i32
    %41 = arith.cmpi eq, %arg1, %c3_i32 : i32
    %42 = arith.extui %41 : i1 to i32
    %c0_i32_25 = arith.constant 0 : i32
    %43 = arith.cmpi ne, %42, %c0_i32_25 : i32
    scf.if %43 {
      %c0_26 = arith.constant 0 : index
      %c0_27 = arith.constant 0 : index
      %44 = vector.load %arg11[%c0_26, %c0_27] : memref<2x32xf32, #tpu.memory_space<vmem>>, vector<2x32xf32>
      %cst_28 = arith.constant 1.562500e-02 : f32
      %45 = vector.broadcast %cst_28 : f32 to vector<2x32xf32>
      %46 = arith.mulf %44, %45 : vector<2x32xf32>
      %c0_29 = arith.constant 0 : index
      %c0_30 = arith.constant 0 : index
      %47 = vector.load %arg6[%c0_29, %c0_30] : memref<32x32xf32, #tpu.memory_space<vmem>>, vector<32x32xf32>
      %cst_31 = arith.constant dense<0.000000e+00> : vector<2x32xf32>
      %48 = tpu.matmul %46, %47, %cst_31 {dimension_numbers = #tpu.dot_dimension_numbers<[1], [0], [0], [1], [0, 0, 1, 1], [], []>} : vector<2x32xf32>, vector<32x32xf32>, vector<2x32xf32> -> vector<2x32xf32>
      %c0_32 = arith.constant 0 : index
      %c0_33 = arith.constant 0 : index
      %49 = vector.load %arg7[%c0_32, %c0_33] : memref<1x32xf32, #tpu.memory_space<vmem>>, vector<1x32xf32>
      %50 = vector.broadcast %49 : vector<1x32xf32> to vector<2x32xf32>
      %51 = arith.addf %48, %50 : vector<2x32xf32>
      %52 = arith.negf %51 : vector<2x32xf32>
      %53 = math.exp %52 : vector<2x32xf32>
      %cst_34 = arith.constant 1.000000e+00 : f32
      %54 = vector.broadcast %cst_34 : f32 to vector<2x32xf32>
      %55 = arith.addf %54, %53 : vector<2x32xf32>
      %56 = arith.divf %54, %55 : vector<2x32xf32>
      %57 = vector.extract_strided_slice %56 {offsets = [0, 0], sizes = [2, 16], strides = [1, 1]} : vector<2x32xf32> to vector<2x16xf32>
      %58 = vector.extract_strided_slice %56 {offsets = [0, 16], sizes = [2, 16], strides = [1, 1]} : vector<2x32xf32> to vector<2x16xf32>
      %cst_35 = arith.constant 1.000000e+00 : f32
      %59 = vector.broadcast %cst_35 : f32 to vector<2x16xf32>
      %60 = arith.subf %59, %57 : vector<2x16xf32>
      %61 = arith.subf %60, %58 : vector<2x16xf32>
      %62 = vector.shape_cast %61 : vector<2x16xf32> to vector<2x16x1xf32>
      %c0_36 = arith.constant 0 : index
      %c0_37 = arith.constant 0 : index
      %c0_38 = arith.constant 0 : index
      %63 = vector.load %arg3[%c0_36, %c0_37, %c0_38] : memref<2x16x32xf32, #tpu.memory_space<vmem>>, vector<2x16x32xf32>
      %64 = vector.broadcast %62 : vector<2x16x1xf32> to vector<2x16x32xf32>
      %65 = arith.mulf %64, %63 : vector<2x16x32xf32>
      %66 = vector.shape_cast %57 : vector<2x16xf32> to vector<2x16x1xf32>
      %c0_39 = arith.constant 0 : index
      %c0_40 = arith.constant 0 : index
      %c0_41 = arith.constant 0 : index
      %67 = vector.load %arg12[%c0_39, %c0_40, %c0_41] : memref<2x16x32xf32, #tpu.memory_space<vmem>>, vector<2x16x32xf32>
      %68 = vector.broadcast %66 : vector<2x16x1xf32> to vector<2x16x32xf32>
      %69 = arith.mulf %68, %67 : vector<2x16x32xf32>
      %70 = arith.addf %65, %69 : vector<2x16x32xf32>
      %c0_42 = arith.constant 0 : index
      %c0_43 = arith.constant 0 : index
      %c0_44 = arith.constant 0 : index
      %71 = vector.load %arg8[%c0_42, %c0_43, %c0_44] : memref<2x16x32xf32, #tpu.memory_space<vmem>>, vector<2x16x32xf32>
      tpu.vector_store %arg8[%c0_42, %c0_43, %c0_44], %70 {strides = array<i32>} : memref<2x16x32xf32, #tpu.memory_space<vmem>>, vector<2x16x32xf32>,
      %72 = arith.truncf %70 : vector<2x16x32xf32> to vector<2x16x32xbf16>
      %c0_45 = arith.constant 0 : index
      %c0_46 = arith.constant 0 : index
      %c0_47 = arith.constant 0 : index
      %73 = vector.load %arg10[%c0_45, %c0_46, %c0_47] : memref<2x16x32xbf16, #tpu.memory_space<vmem>>, vector<2x16x32xbf16>
      tpu.vector_store %arg10[%c0_45, %c0_46, %c0_47], %72 {strides = array<i32>} : memref<2x16x32xbf16, #tpu.memory_space<vmem>>, vector<2x16x32xbf16>,
    } else {
    }
    return
  }
  func.func @transform_0(%arg0: i32, %arg1: i32) -> (i32, i32, i32) {
    %c0_i32 = arith.constant 0 : i32
    %c0_i32_0 = arith.constant 0 : i32
    %c0_i32_1 = arith.constant 0 : i32
    return %c0_i32, %arg1, %c0_i32_0 : i32, i32, i32
  }
  func.func @transform_1(%arg0: i32, %arg1: i32) -> (i32, i32, i32) {
    %c0_i32 = arith.constant 0 : i32
    %c0_i32_0 = arith.constant 0 : i32
    %c0_i32_1 = arith.constant 0 : i32
    return %c0_i32, %arg0, %c0_i32_0 : i32, i32, i32
  }
  func.func @transform_2(%arg0: i32, %arg1: i32) -> (i32, i32) {
    %c0_i32 = arith.constant 0 : i32
    %c0_i32_0 = arith.constant 0 : i32
    return %c0_i32, %arg0 : i32, i32
  }
  func.func @transform_3(%arg0: i32, %arg1: i32) -> (i32, i32) {
    %c0_i32 = arith.constant 0 : i32
    %c0_i32_0 = arith.constant 0 : i32
    return %c0_i32, %arg0 : i32, i32
  }
  func.func @transform_4(%arg0: i32, %arg1: i32) -> (i32, i32) {
    %c0_i32 = arith.constant 0 : i32
    %c0_i32_0 = arith.constant 0 : i32
    return %c0_i32, %arg0 : i32, i32
  }
  func.func @transform_5(%arg0: i32, %arg1: i32) -> (i32, i32) {
    %c0_i32 = arith.constant 0 : i32
    %c0_i32_0 = arith.constant 0 : i32
    return %c0_i32, %arg0 : i32, i32
  }
  func.func @transform_6(%arg0: i32, %arg1: i32) -> (i32, i32, i32) {
    %c0_i32 = arith.constant 0 : i32
    %c0_i32_0 = arith.constant 0 : i32
    %c0_i32_1 = arith.constant 0 : i32
    return %c0_i32, %arg0, %c0_i32_0 : i32, i32, i32
  }
  func.func @transform_7(%arg0: i32, %arg1: i32) -> (i32, i32, i32) {
    %c0_i32 = arith.constant 0 : i32
    %c0_i32_0 = arith.constant 0 : i32
    return %c0_i32, %arg1, %arg0 : i32, i32, i32
  }
  func.func @transform_8(%arg0: i32, %arg1: i32) -> (i32, i32, i32) {
    %c0_i32 = arith.constant 0 : i32
    %c0_i32_0 = arith.constant 0 : i32
    %c0_i32_1 = arith.constant 0 : i32
    return %c0_i32, %arg0, %c0_i32_0 : i32, i32, i32
  }
}

module attributes {stable_mosaic.version = 11 : i64} {
  func.func @_fetch_kernel(%arg0: i32, %arg1: memref<2x32x16xbf16, #tpu.memory_space<vmem>>, %arg2: memref<2x16x32xbf16, #tpu.memory_space<vmem>>, %arg3: memref<2x32x32xf32, #tpu.memory_space<vmem>>) attributes {dimension_semantics = [#tpu.dimension_semantics<parallel>], iteration_bounds = array<i64: 2>, scalar_prefetch = 0 : i64, scratch_operands = 0 : i64, tpu.core_type = #tpu.core_type<tc>, window_params = [{transform_indices = @transform_0, window_bounds = array<i64: 2, 32, 16>}, {pipeline_mode = #tpu.pipeline_mode<synchronous>, transform_indices = @transform_1, window_bounds = array<i64: 2, 16, 32>}, {transform_indices = @transform_2, window_bounds = array<i64: 2, 32, 32>}]} {
    %c0 = arith.constant 0 : index
    %c0_0 = arith.constant 0 : index
    %c0_1 = arith.constant 0 : index
    %0 = vector.load %arg1[%c0, %c0_0, %c0_1] : memref<2x32x16xbf16, #tpu.memory_space<vmem>>, vector<2x32x16xbf16>
    %c0_2 = arith.constant 0 : index
    %c0_3 = arith.constant 0 : index
    %c0_4 = arith.constant 0 : index
    %1 = vector.load %arg2[%c0_2, %c0_3, %c0_4] : memref<2x16x32xbf16, #tpu.memory_space<vmem>>, vector<2x16x32xbf16>
    "tpu.trace_start"() <{level = 10 : i32, message = "bsm,bme->bse"}> : () -> ()
    %cst = arith.constant dense<0.000000e+00> : vector<2x32x32xf32>
    %2 = tpu.matmul %0, %1, %cst {dimension_numbers = #tpu.dot_dimension_numbers<[2], [1], [1], [2], [0, 0, 0, 1, 1, 2], [0], [0]>} : vector<2x32x16xbf16>, vector<2x16x32xbf16>, vector<2x32x32xf32> -> vector<2x32x32xf32>
    "tpu.trace_stop"() : () -> ()
    %c0_5 = arith.constant 0 : index
    %c0_6 = arith.constant 0 : index
    %c0_7 = arith.constant 0 : index
    %3 = vector.load %arg3[%c0_5, %c0_6, %c0_7] : memref<2x32x32xf32, #tpu.memory_space<vmem>>, vector<2x32x32xf32>
    tpu.vector_store %arg3[%c0_5, %c0_6, %c0_7], %2 {strides = array<i32>} : memref<2x32x32xf32, #tpu.memory_space<vmem>>, vector<2x32x32xf32>,
    return
  }
  func.func @transform_0(%arg0: i32) -> (i32, i32, i32) {
    %c0_i32 = arith.constant 0 : i32
    %c0_i32_0 = arith.constant 0 : i32
    %c0_i32_1 = arith.constant 0 : i32
    return %c0_i32, %arg0, %c0_i32_0 : i32, i32, i32
  }
  func.func @transform_1(%arg0: i32) -> (i32, i32, i32) {
    %c0_i32 = arith.constant 0 : i32
    %c0_i32_0 = arith.constant 0 : i32
    %c0_i32_1 = arith.constant 0 : i32
    %c0_i32_2 = arith.constant 0 : i32
    return %c0_i32, %c0_i32_0, %c0_i32_1 : i32, i32, i32
  }
  func.func @transform_2(%arg0: i32) -> (i32, i32, i32) {
    %c0_i32 = arith.constant 0 : i32
    %c0_i32_0 = arith.constant 0 : i32
    %c0_i32_1 = arith.constant 0 : i32
    return %c0_i32, %arg0, %c0_i32_0 : i32, i32, i32
  }
}

</mosaic_0001>

<bundles_post_ra>
// kernel: memory_gater.3
= control target key start
LH: loop header
LB: loop body
LE: loop exit
PB: predicated region body
PF: predicated region fallthrough
CT: control target
= control target key end

     0   :  { %s615_s9 = smov 0   ;;  %s617_s10 = smov 0   ;;  %s707_s0 = inlined_call_operand.vmem [shape: bf16[2,64,16], index: 0, kind: input, shape index: {}]   ;;  %s708_s1 = inlined_call_operand.vmem [shape: bf16[2,16,32], index: 1, kind: input, shape index: {}]   ;;  %s709_s2 = inlined_call_operand.vmem [shape: f32[2,64,32], index: 2, kind: output, shape index: {}]  }
   0x1   :  { %s619_s11 = smov 0  }
   0x2 LB: > { %s501_s12 = sadd.s32 4294967295, %s598_s11   ;;  %s632_s13 = sadd.s32 1, %s598_s11   ;;  %s598_s11 = sphi %s619_s11, %s713_s11   ;;  %s594_s10 = sphi %s617_s10, %s712_s10   ;;  %s590_s9 = sphi %s615_s9, %s711_s9  }
   0x3   : > { %s16_s14 = ssub.s32 %s598_s11, %s632_s13  ;;  %s19_s15 = sadd.s32 1, %s594_s10 }
   0x4   : > { %p17_p0 = scmp.eq.s32.totalorder %s16_s14, 0  ;;  %p26_p1 = scmp.ne.s32.totalorder %s594_s10, %s590_s9 }
   0x5   : > { %p27_p2 = scmp.eq.s32.totalorder %s598_s11, 0  ;;  %p77_p3 = scmp.eq.s32.totalorder %s501_s12, 1 }
   0x6   : > { %s643_s16 = scalar_select %p17_p0, %s594_s10, %s19_s15  }
   0x7   : > { %p28_p4 = por %p27_p2, %p26_p1  ;;  %p645_p5 = por %p77_p3, %p26_p1 }
   0x8   : > { %p504_p6 = scmp.ge.s32.totalorder %s598_s11, 2 }
   0xa   : > { %102 = sbr.rel (%p504_p6) target bundleno = 24 (0x18), region = 20 }
  0x11   : > { %105 = sbr.rel (!%p28_p4) target bundleno = 24 (0x18), region = 24  ;;  %s107_s18 = sand.u32 (%p28_p4), 1, %s594_s10  }
  0x12   : > { %s526_s19 = sshll.u32 (%p28_p4), %s598_s11, 4  ;;  %s505_s20 = sshll.u32 (%p28_p4), %s107_s18, 5 }
  0x13   : > { %s112_s23 = scalar_lea.vmem (%p28_p4), %s707_s0, %s526_s19  ;;  %s109_s24 = scalar_lea.vmem (%p28_p4), [#allocation2], %s505_s20 }
  0x14   : > { %v128_v0 = vld [vmem:[%s112_s23] sm:$0xff] (%p28_p4)   ;;  %v132_v1 = vld [vmem:[%s112_s23 + $0x8] sm:$0xff] (%p28_p4)  }
  0x15   : > { %v136_v2 = vld [vmem:[%s112_s23 + $0x20] sm:$0xff] (%p28_p4)   ;;  %129 = vst [vmem:[%s109_s24] sm:$0xff] (%p28_p4), %v128_v0   ;;  %133 = vst [vmem:[%s109_s24 + $0x8] sm:$0xff] (%p28_p4), %v132_v1   ;;  %v140_v3 = vld [vmem:[%s112_s23 + $0x28] sm:$0xff] (%p28_p4)  }
  0x16   : > { %137 = vst [vmem:[%s109_s24 + $0x10] sm:$0xff] (%p28_p4), %v136_v2   ;;  %141 = vst [vmem:[%s109_s24 + $0x18] sm:$0xff] (%p28_p4), %v140_v3  }
  0x18 PF: > { %p508_p7 = scmp.ge.s32.totalorder %s598_s11, 1  ;;  %p181_p8 = scmp.lt.s32.totalorder %s598_s11, 3 }
  0x1a   : > { %p182_p9 = pnand %p508_p7, %p181_p8 }
  0x1b   : > { %v570_v4 = vld [vmem:[%s708_s1] sm:$0xff] (!%p182_p9)   ;;  %s188_s27 = sand.u32 (!%p182_p9), 1, %s590_s9   ;;  %v571_v5 = vld [vmem:[%s708_s1 + $0x8] sm:$0xff] (!%p182_p9)   ;;  %vm239_vm0 = vcmask (!%p182_p9), 130048   ;;  %vm366_vm1 = vcmask (!%p182_p9), 261120  }
  0x1c   : > { %185 = sbr.rel (%p182_p9) target bundleno = 257 (0x101), region = 65  ;;  %s509_s30 = sshll.u32 (!%p182_p9), %s188_s27, 5  ;;  %534 = vmatprep.subr.bf16.mxu0 (!%p182_p9), %v570_v4  ;;  %540 = vmatprep.subr.bf16.mxu1 (!%p182_p9), %v571_v5 }
  0x1d   : > { %535 = vmatpush3.bf16.msra.mxu0 (!%p182_p9), %v570_v4  ;;  %s190_s3 = scalar_lea.vmem (!%p182_p9), [#allocation2], %s509_s30  ;;  %541 = vmatpush3.bf16.msra.mxu1 (!%p182_p9), %v571_v5  ;;  %s510_s4 = sshll.u32 (!%p182_p9), %s188_s27, 6 }
  0x1e   : > { %v572_v6 = vld [vmem:[%s190_s3] sm:$0xff] (!%p182_p9)   ;;  %v573_v7 = vld [vmem:[%s190_s3 + $0x10] sm:$0xff] (!%p182_p9)   ;;  %v574_v8 = vld [vmem:[%s190_s3 + $0x8] sm:$0xff] (!%p182_p9)   ;;  %s664_s5 = scalar_lea.vmem (!%p182_p9), [#allocation3], %s510_s4 }
  0x1f   : > { %536 = vmatprep.mubr.msk.bf16.mxu0 (!%p182_p9), %vm239_vm0, %v572_v6  ;;  %542 = vmatprep.mubr.msk.bf16.mxu1 (!%p182_p9), %vm239_vm0, %v573_v7  ;;  %v575_v9 = vld [vmem:[%s190_s3 + $0x18] sm:$0xff] (!%p182_p9)  }
  0x20   : > { %537 = vmatmul.mubr.msk.bf16.vlgmr.msra.gmra.mrb[0].mxu0 (!%p182_p9), %vm239_vm0, %v574_v8  ;;  %543 = vmatmul.mubr.msk.bf16.vlgmr.msra.gmra.mrb[0].mxu1 (!%p182_p9), %vm239_vm0, %v575_v9 }
  0x23   : > { %s527_s6 = sshll.u32 (%p645_p5), %s501_s12, 5 }
  0x24   : > { %s384_s9 = scalar_lea.vmem (%p645_p5), %s709_s2, %s527_s6 }
  0xf1   : > { %381 = sbr.rel (!%p645_p5) target bundleno = 257 (0x101), region = 73 }
  0xf3   : > { %v538_v10 = vpop.f32.mrb[0].mxu0  ;;  %v544_v11 = vpop.f32.mrb[0].mxu1 }
  0xf4   : > { %369 = vst.msk [vmem:[%s664_s5 + $0x10] sm:$0xff] %vm366_vm1, %v538_v10  ;;  %v280_v12 = vpop.f32.mrb[1].mxu0  ;;  %373 = vst.msk [vmem:[%s664_s5 + $0x30] sm:$0xff] %vm366_vm1, %v544_v11  ;;  %v351_v13 = vpop.f32.mrb[1].mxu1 }
  0xf5   : > { %367 = vst.msk [vmem:[%s664_s5] sm:$0xff] %vm366_vm1, %v280_v12  ;;  %v539_v14 = vpop.f32.mrb[2].mxu0  ;;  %371 = vst.msk [vmem:[%s664_s5 + $0x20] sm:$0xff] %vm366_vm1, %v351_v13  ;;  %v545_v15 = vpop.f32.mrb[2].mxu1 }
  0xf6   : > { %370 = vst.msk [vmem:[%s664_s5 + $0x18] sm:$0xff] %vm366_vm1, %v539_v14  ;;  %v283_v16 = vpop.f32.mrb[3].mxu0  ;;  %374 = vst.msk [vmem:[%s664_s5 + $0x38] sm:$0xff] %vm366_vm1, %v545_v15  ;;  %v354_v17 = vpop.f32.mrb[3].mxu1 }
  0xf7   : > { %368 = vst.msk [vmem:[%s664_s5 + $0x8] sm:$0xff] %vm366_vm1, %v283_v16  ;;  %372 = vst.msk [vmem:[%s664_s5 + $0x28] sm:$0xff] %vm366_vm1, %v354_v17 }
  0xfb   : > { %v430_v20 = vld [vmem:[%s664_s5 + $0x10] sm:$0xff] }
  0xfc   : > { %v426_v18 = vld [vmem:[%s664_s5] sm:$0xff]  ;;  %431 = vst [vmem:[%s384_s9 + $0x10] sm:$0xff] %v430_v20  ;;  %v438_v24 = vld [vmem:[%s664_s5 + $0x30] sm:$0xff] }
  0xfd   : > { %v432_v21 = vld [vmem:[%s664_s5 + $0x18] sm:$0xff]  ;;  %v434_v22 = vld [vmem:[%s664_s5 + $0x20] sm:$0xff]  ;;  %427 = vst [vmem:[%s384_s9] sm:$0xff] %v426_v18  ;;  %439 = vst [vmem:[%s384_s9 + $0x50] sm:$0xff] %v438_v24 }
  0xfe   : > { %v428_v19 = vld [vmem:[%s664_s5 + $0x8] sm:$0xff]  ;;  %433 = vst [vmem:[%s384_s9 + $0x18] sm:$0xff] %v432_v21  ;;  %435 = vst [vmem:[%s384_s9 + $0x40] sm:$0xff] %v434_v22  ;;  %v440_v25 = vld [vmem:[%s664_s5 + $0x38] sm:$0xff] }
  0xff   : > { %v436_v23 = vld [vmem:[%s664_s5 + $0x28] sm:$0xff]  ;;  %429 = vst [vmem:[%s384_s9 + $0x8] sm:$0xff] %v428_v19  ;;  %441 = vst [vmem:[%s384_s9 + $0x58] sm:$0xff] %v440_v25 }
 0x100   : > { %437 = vst [vmem:[%s384_s9 + $0x48] sm:$0xff] %v436_v23 }
 0x101 PF: > { %p9_p10 = scmp.ge.s32.totalorder %s632_s13, 4   ;;  %s711_s9 = smov %s594_s10 }
 0x102   : > { %s712_s10 = smov %s643_s16  ;;  %s713_s11 = smov %s632_s13 }
 0x103   :  { %11 = sbr.rel (!%p9_p10) target bundleno = 2 (0x2), region = 142 }

// kernel: memory_gater.2
= control target key start
LH: loop header
LB: loop body
LE: loop exit
PB: predicated region body
PF: predicated region fallthrough
CT: control target
= control target key end

     0   :  { %s1555_s27 = smov 0   ;;  %s1557_s28 = smov 0   ;;  %s1736_s0 = inlined_call_operand.vmem [shape: f32[2,64,32], index: 0, kind: input, shape index: {}]   ;;  %s1737_s1 = inlined_call_operand.vmem [shape: f32[2,16,32], index: 1, kind: input, shape index: {}, may-alias: {1,6}]   ;;  %s1738_s2 = inlined_call_operand.vmem [shape: bf16[32,32], index: 2, kind: input, shape index: {}]   ;;  %s1739_s3 = inlined_call_operand.vmem [shape: f32[1,32], index: 3, kind: input, shape index: {}]   ;;  %s1740_s4 = inlined_call_operand.vmem [shape: f32[32,32], index: 4, kind: input, shape index: {}]   ;;  %s1741_s5 = inlined_call_operand.vmem [shape: f32[1,32], index: 5, kind: input, shape index: {}]   ;;  %s1742_s6 = inlined_call_operand.vmem [shape: f32[2,16,32], index: 6, kind: output, shape index: {0}, may-alias: {1,6}]   ;;  %s1743_s7 = inlined_call_operand.vmem [shape: bf16[2,64,16], index: 7, kind: output, shape index: {1}]   ;;  %s1744_s8 = inlined_call_operand.vmem [shape: bf16[2,16,32], index: 8, kind: output, shape index: {2}]  }
   0x1   :  { %s1559_s29 = smov 0   ;;  %s1561_s30 = smov 0  }
   0x2   :  { %s1563_s9 = smov 0  }
   0x3 LB: > { %s28_s10 = sadd.s32 1, %s1496_s30  ;;  %s1271_s11 = sadd.s32 4294967295, %s1500_s9   ;;  %s1500_s9 = sphi %s1563_s9, %s19_s9   ;;  %s1496_s30 = sphi %s1561_s30, %s1749_s30   ;;  %s1492_s29 = sphi %s1559_s29, %s1748_s29   ;;  %s1488_s28 = sphi %s1557_s28, %s1747_s28   ;;  %s1484_s27 = sphi %s1555_s27, %s1746_s27  }
   0x4   : > { %p29_p0 = scmp.ge.s32.totalorder %s28_s10, 4  ;;  %p45_p1 = scmp.ne.s32.totalorder %s1488_s28, %s1484_s27 }
   0x5   : > { %p46_p2 = scmp.eq.s32.totalorder %s1500_s9, 0  ;;  %p233_p4 = scmp.eq.s32.totalorder %s1271_s11, 3 }
   0x6   : > { %s1751_s10 = smov (%p29_p0, %s28_s10), 0  ;;  %s38_s13 = sadd.s32 1, %s1488_s28 }
   0x7   : > { %p47_p3 = por %p46_p2, %p45_p1  ;;  %s35_s12 = ssub.s32 %s1496_s30, %s1751_s10 }
   0x8   : > { %p36_p5 = scmp.eq.s32.totalorder %s35_s12, 0  ;;  %p1590_p6 = por %p233_p4, %p45_p1 }
   0x9   : > { %p1279_p7 = scmp.ge.s32.totalorder %s1500_s9, 4 }
   0xa   : > { %s1595_s15 = scalar_select %p36_p5, %s1488_s28, %s38_s13  }
   0xb   : > { %316 = sbr.rel (%p1279_p7) target bundleno = 25 (0x19), region = 36 }
  0x12   : > { %319 = sbr.rel (!%p47_p3) target bundleno = 25 (0x19), region = 40  ;;  %s321_s16 = sand.u32 (%p47_p3), 1, %s1488_s28  }
  0x13   : > { %s1319_s17 = sshll.u32 (%p47_p3), %s1496_s30, 4  ;;  %s1280_s18 = sshll.u32 (%p47_p3), %s321_s16, 5 }
  0x14   : > { %s326_s21 = scalar_lea.vmem (%p47_p3), %s1736_s0, %s1319_s17  ;;  %s323_s22 = scalar_lea.vmem (%p47_p3), [#allocation4], %s1280_s18 }
  0x15   : > { %v360_v0 = vld [vmem:[%s326_s21] sm:$0xff] (%p47_p3)  ;;  %v362_v1 = vld [vmem:[%s326_s21 + $0x8] sm:$0xff] (%p47_p3) }
  0x16   : > { %v364_v2 = vld [vmem:[%s326_s21 + $0x40] sm:$0xff] (%p47_p3)  ;;  %361 = vst [vmem:[%s323_s22] sm:$0xff] (%p47_p3), %v360_v0  ;;  %363 = vst [vmem:[%s323_s22 + $0x8] sm:$0xff] (%p47_p3), %v362_v1  ;;  %v366_v3 = vld [vmem:[%s326_s21 + $0x48] sm:$0xff] (%p47_p3) }
  0x17   : > { %365 = vst [vmem:[%s323_s22 + $0x10] sm:$0xff] (%p47_p3), %v364_v2  ;;  %367 = vst [vmem:[%s323_s22 + $0x18] sm:$0xff] (%p47_p3), %v366_v3 }
  0x19 PF: > { %p1283_p8 = scmp.ge.s32.totalorder %s1500_s9, 1  ;;  %p372_p9 = scmp.lt.s32.totalorder %s1500_s9, 5 }
  0x1b   : > { %p373_p10 = pnand %p1283_p8, %p372_p9 }
  0x1c   : > { %s379_s23 = sand.u32 (!%p373_p10), 1, %s1484_s27   ;;  %p1286_p11 = scmp.ne.s32.totalorder (!%p373_p10), %s1492_s29, 0 }
  0x1d   : > { %376 = sbr.rel (%p373_p10) target bundleno = 785 (0x311), region = 78  ;;  %s1284_s24 = sshll.u32 (!%p373_p10), %s379_s23, 5 }
  0x1e   : > { %s1285_s25 = sshll.u32 (!%p373_p10), %s379_s23, 4  ;;  %s381_s26 = scalar_lea.vmem (!%p373_p10), [#allocation4], %s1284_s24 }
  0x1f   : > { %v475_v4 = vld [vmem:[%s381_s26] sm:$0xff] (!%p373_p10)  ;;  %v476_v5 = vld [vmem:[%s381_s26 + $0x8] sm:$0xff] (!%p373_p10)  ;;  %v477_v6 = vld [vmem:[%s381_s26 + $0x10] sm:$0xff] (!%p373_p10)  ;;  %s1606_s11 = scalar_lea.vmem (!%p373_p10), [#allocation5], %s1285_s25 }
  0x20   : > { %v478_v7 = vld [vmem:[%s381_s26 + $0x18] sm:$0xff] (!%p373_p10) }
  0x24   : > { %482 = sbr.rel (%p1286_p11) target bundleno = 43 (0x2b), region = 86  ;;  %vm483_vm0 = vcmask (!%p1286_p11), 254976   ;;  %vm485_vm1 = vcmask (!%p1286_p11), 261120   ;;  %v1502_v8 = vmov (!%p1286_p11), 0.0  }
  0x25   : > { %484 = vst.msk [vmem:[#allocation2] sm:$0x3] (!%p1286_p11), %vm483_vm0, %v1502_v8 }
  0x26   : > { %486 = vst.msk [vmem:[#allocation3] sm:$0xff] (!%p1286_p11), %vm485_vm1, %v1502_v8  ;;  %487 = vst.msk [vmem:[#allocation3 + $0x8] sm:$0xff] (!%p1286_p11), %vm485_vm1, %v1502_v8 }
  0x27   : > { %488 = vst.msk [vmem:[#allocation3 + $0x10] sm:$0xff] (!%p1286_p11), %vm485_vm1, %v1502_v8  ;;  %489 = vst.msk [vmem:[#allocation3 + $0x18] sm:$0xff] (!%p1286_p11), %vm485_vm1, %v1502_v8 }
  0x2b PF: > { %v1428_v9 = vld [vmem:[%s1738_s2] sm:$0xff]   ;;  %vm491_vm2 = vcmask 261120   ;;  %v518_v10 = vpack.c.bf16 %v476_v5, %v475_v4  ;;  %v1429_v11 = vld [vmem:[%s1738_s2 + $0x8] sm:$0xff]   ;;  %v1620_v20 = vpack.c.bf16 %v478_v7, %v477_v6  ;;  %vm512_vm3 = vcmask 1041409   ;;  %s1505_s19 = smov 112   ;;  %p1302_p12 = scmp.ne.s32.totalorder %s1492_s29, 3 }
  0x2c   : > { %v492_v12 = vsel %vm491_vm2, %v475_v4, 0.0  ;;  %1342 = vmatprep.subr.bf16.mxu0 %v1428_v9  ;;  %v493_v13 = vsel %vm491_vm2, %v476_v5, 0.0  ;;  %v501_v14 = vsel %vm491_vm2, %v477_v6, 0.0  ;;  %v502_v15 = vsel %vm491_vm2, %v478_v7, 0.0  ;;  %v490_v29 = vld [vmem:[#allocation2] sm:$0x3] }
  0x2d   : > { %1346 = vmatprep.mubr.msk.bf16.mxu0 %vm491_vm2, %v518_v10  ;;  %1343 = vmatpush3.bf16.msra.mxu0 %v1428_v9  ;;  %v494_v16 = vadd.f32 %v493_v13, %v492_v12  ;;  %v503_v17 = vadd.f32 %v502_v15, %v501_v14  ;;  %vm516_vm4 = vcmask 254976   ;;  %v1503_v34 = vmov 0.0   ;;  %v1291_v35 = vld [vmem:[%s1739_s3] ss:$0 sm:$0xff]  ;;  %s1509_s16 = smov (!%p1302_p12), 112  }
  0x2e   : > { %1344 = vmatprep.subr.bf16.mxu0 %v1429_v11  ;;  %1350 = vmatprep.subr.bf16.mxu1 %v1503_v34  ;;  %vm1504_vm5 = vmmov 0   ;;  %vm602_vm6 = vcmask 130048   ;;  %vm815_vm7 = vcmask 125952   ;;  %vm1507_vm8 = vmmov (!%p1302_p12), 0  }
  0x2f   : > { %v495_v18 = vrot.slane %v494_v16, 4  ;;  %v504_v19 = vrot.slane %v503_v17, 4  ;;  %1352 = vmatprep.mubr.msk.bf16.mxu1 %vm1504_vm5, %v1503_v34  ;;  %1351 = vmatpush3.bf16.msra.mxu1 %v518_v10  ;;  %vm1006_vm9 = vcmask (!%p1302_p12), 257024  }
  0x30   : > { %1356 = vmatprep.subr.bf16.mxu1 %v1503_v34 }
  0x31   : > { %1345 = vmatpush3.bf16.msra.mxu0 %v1429_v11  ;;  %v496_v21 = vadd.f32 %v495_v18, %v494_v16  ;;  %v505_v22 = vadd.f32 %v504_v19, %v503_v17 }
  0x33   : > { %v497_v23 = vrot.slane %v496_v21, 2  ;;  %v506_v24 = vrot.slane %v505_v22, 2 }
  0x34   : > { %1347 = vmatmul.mubr.msk.bf16.vlgmr.msra.gmra.mrb[0].mxu0 %vm491_vm2, %v1620_v20 }
  0x35   : > { %v498_v25 = vadd.f32 %v497_v23, %v496_v21  ;;  %v507_v26 = vadd.f32 %v506_v24, %v505_v22 }
  0x37   : > { %v499_v27 = vrot.slane %v498_v25, 1  ;;  %v508_v28 = vrot.slane %v507_v26, 1 }
  0x39   : > { %v500_v30 = vadd.f32 %v499_v27, %v498_v25  ;;  %v509_v31 = vadd.f32 %v508_v28, %v507_v26 }
  0x3b   : > { %v513_v32 = vsel %vm512_vm3, %v509_v31, %v500_v30 }
  0x3c   : > { %v515_v33 = vadd.f32 %v513_v32, %v490_v29 }
  0x3e   : > { %517 = vst.msk [vmem:[#allocation2] sm:$0x3] %vm516_vm4, %v515_v33 }
 0x107   : > { %v1348_v36 = vpop.f32.mrb[0].mxu0 }
 0x108   : > { %v600_v37 = vadd.f32 %v1348_v36, %v1291_v35  ;;  %v576_v38 = vpop.f32.mrb[1].mxu0 }
 0x109   : > { %v598_v39 = vadd.f32 %v1291_v35, %v576_v38  ;;  %v1349_v40 = vpop.f32.mrb[2].mxu0 }
 0x10a   : > { %v604_v41 = vsel %vm602_vm6, %v600_v37, -inf  ;;  %v601_v42 = vadd.f32 %v1349_v40, %v1291_v35  ;;  %v579_v43 = vpop.f32.mrb[3].mxu0  ;;  %v1296_v2 = vmul.f32 -1.442695, %v600_v37  ;;  %v633_v40 = vld [vmem:[#allocation3] sm:$0xff] }
 0x10b   : > { %v603_v44 = vsel %vm602_vm6, %v598_v39, -inf  ;;  %v1294_v45 = vmul.f32 -1.442695, %v598_v39  ;;  %v599_v46 = vadd.f32 %v1291_v35, %v579_v43 }
 0x10c   : > { %v605_v47 = vmax.f32 %v603_v44, %v604_v41  ;;  %v607_v48 = vsel %vm602_vm6, %v601_v42, -inf  ;;  %v1297_v49 = vmul.f32 -1.442695, %v601_v42 }
 0x10d   : > { %1430 = vpow2.f32 %v1294_v45  ;;  %v606_v50 = vsel %vm602_vm6, %v599_v46, -inf  ;;  %v1295_v51 = vmul.f32 -1.442695, %v599_v46 }
 0x10e   : > { %v609_v52 = vsub.f32 %v598_v39, %v605_v47  ;;  %v611_v53 = vsub.f32 %v600_v37, %v605_v47  ;;  %1432 = vpow2.f32 %v1297_v49  ;;  %v608_v54 = vmax.f32 %v606_v50, %v607_v48  ;;  %v636_v48 = vld [vmem:[#allocation3 + $0x18] sm:$0xff] }
 0x10f   : > { %1434 = vpow2.f32 %v1295_v51 }
 0x110   : > { %v613_v55 = vmul.f32 1.442695, %v609_v52  ;;  %v617_v56 = vmul.f32 1.442695, %v611_v53  ;;  %v610_v57 = vsub.f32 %v599_v46, %v608_v54  ;;  %v612_v58 = vsub.f32 %v601_v42, %v608_v54  ;;  %v634_v42 = vld [vmem:[#allocation3 + $0x8] sm:$0xff]  ;;  %v826_v54 = vld [vmem:[%s1740_s4] sm:$0xff] (!%p1302_p12) }
 0x112   : > { %1436 = vpow2.f32 %v613_v55  ;;  %v615_v59 = vmul.f32 1.442695, %v610_v57  ;;  %v619_v60 = vmul.f32 1.442695, %v612_v58  ;;  %v827_v55 = vld [vmem:[%s1740_s4 + $0x8] sm:$0xff] (!%p1302_p12)  ;;  %v1506_v57 = vmov (!%p1302_p12), 0.0|0.0  }
 0x113   : > { %1438 = vpow2.f32 %v617_v56  ;;  %v828_v56 = vld [vmem:[%s1740_s4 + $0x10] sm:$0xff] (!%p1302_p12)  ;;  %1373 = vmatprep.subr.bf16.mxu0 (!%p1302_p12), %v1506_v57  ;;  %v1374_v58 = vpack.c.bf16 (!%p1302_p12), %v827_v55, %v826_v54 }
 0x114   : > { %1440 = vpow2.f32 %v615_v59  ;;  %v829_v59 = vld [vmem:[%s1740_s4 + $0x18] sm:$0xff] (!%p1302_p12) }
 0x115   : > { %1442 = vpow2.f32 %v619_v60  ;;  %v1508_v60 = vmov (!%p1302_p12), 0.0   ;;  %1375 = vmatpush3.bf16.msra.mxu0 (!%p1302_p12), %v1374_v58 }
 0x116   : > { %1370 = vmatprep.mubr.msk.f32.mxu0 (!%p1302_p12), %vm1507_vm8, %v1508_v60  ;;  %1376 = vmatprep.subr.bf16.mxu0 (!%p1302_p12), %v1506_v57 }
 0x117   : > { %v1431_v61 = vpop.eup %1430 }
 0x118   : > { %v1433_v62 = vpop.eup %1432  ;;  %v779_v63 = vadd.f32 1.0, %v1431_v61  ;;  %v1377_v61 = vpack.c.bf16 (!%p1302_p12), %v829_v59, %v828_v56 }
 0x119   : > { %v1435_v0 = vpop.eup %1434  ;;  %v782_v4 = vadd.f32 1.0, %v1433_v62  ;;  %v824_v62 = vld [vmem:[#allocation2] sm:$0x3] (!%p1302_p12) }
 0x11a   : > { %1444 = vrcp.f32 %v779_v63  ;;  %v780_v1 = vadd.f32 1.0, %v1435_v0  ;;  %v825_v63 = vmul.f32 (!%p1302_p12), 0.015625, %v824_v62  ;;  %1378 = vmatpush3.bf16.msra.mxu0 (!%p1302_p12), %v1377_v61  ;;  %v1303_v0 = vld [vmem:[%s1741_s5] ss:$0 sm:$0xff] (!%p1302_p12) }
 0x11c   : > { %v1437_v3 = vpop.eup %1436  ;;  %1446 = vrcp.f32 %v780_v1 }
 0x11d   : > { %v1439_v5 = vpop.eup %1438  ;;  %v621_v6 = vsel %vm602_vm6, %v1437_v3, 0.0  ;;  %1448 = vpow2.f32 %v1296_v2  ;;  %1371 = vmatmul.mubr.msk.f32.vlgmr.msra.gmra.mrb[0].mxu0 (!%p1302_p12), %vm491_vm2, %v825_v63 }
 0x11e   : > { %v1441_v7 = vpop.eup %1440  ;;  %v622_v8 = vsel %vm602_vm6, %v1439_v5, 0.0  ;;  %1450 = vrcp.f32 %v782_v4 }
 0x11f   : > { %v1443_v9 = vpop.eup %1442  ;;  %v623_v10 = vadd.f32 %v622_v8, %v621_v6  ;;  %v624_v11 = vsel %vm602_vm6, %v1441_v7, 0.0 }
 0x120   : > { %v625_v12 = vsel %vm602_vm6, %v1443_v9, 0.0 }
 0x121   : > { %v626_v13 = vadd.f32 %v625_v12, %v624_v11  ;;  %1452 = vrcp.f32 %v623_v10 }
 0x123   : > { %1454 = vrcp.f32 %v626_v13 }
 0x124   : > { %v1445_v14 = vpop.eup %1444 }
 0x125   : > { %v1320_v15 = vpack.c.bf16 %v1445_v14, %v1445_v14 }
 0x126   : > { %v1447_v16 = vpop.eup %1446 }
 0x127   : > { %803 = vrot.lane.b32.xlu1 %v1320_v15, %s1505_s19  ;;  %v1449_v17 = vpop.eup %1448  ;;  %v1321_v18 = vpack.c.bf16 %v1447_v16, %v1447_v16 }
 0x128   : > { %v1451_v19 = vpop.eup %1450  ;;  %v781_v24 = vadd.f32 1.0, %v1449_v17 }
 0x129   : > { %v1323_v26 = vpack.c.bf16 %v1451_v19, %v1451_v19 }
 0x12a   : > { %1456 = vrcp.f32 %v781_v24  ;;  %v945_v24 = vld [vmem:[%s1737_s1 + $0x8] sm:$0xff] (!%p1302_p12) }
 0x12b   : > { %v1453_v21 = vpop.eup %1452  ;;  %805 = vrot.lane.b32.xlu1 %v1321_v18, %s1505_s19 }
 0x12c   : > { %v629_v22 = vmul.f32 %v1453_v21, %v1437_v3  ;;  %v631_v23 = vmul.f32 %v1453_v21, %v1439_v5 }
 0x12d   : > { %v1455_v25 = vpop.eup %1454 }
 0x12e   : > { %v630_v27 = vmul.f32 %v1455_v25, %v1441_v7  ;;  %v632_v28 = vmul.f32 %v1455_v25, %v1443_v9  ;;  %v922_v7 = vlaneseq (!%p1302_p12)  ;;  %v944_v25 = vld [vmem:[%s1737_s1] sm:$0xff] (!%p1302_p12) }
 0x12f   : > { %809 = vrot.lane.b32.xlu1 %v1323_v26, %s1505_s19 }
 0x130   : > { %v637_v29 = vpack.c.bf16 %v630_v27, %v629_v22  ;;  %v638_v30 = vpack.c.bf16 %v632_v28, %v631_v23  ;;  %v923_v8 = vshrl.u32 (!%p1302_p12), %v922_v7, 7 }
 0x132   : > { %639 = vxpose.xlu0.c.b16.start.end [1/1] (short) (narrow) %v637_v29, 16  ;;  %v924_v9 = vsub.s32 (!%p1302_p12), 0, %v923_v8  ;;  %v935_v10 = vsub.s32 (!%p1302_p12), 1, %v923_v8 }
 0x134   : > { %v1457_v31 = vpop.eup %1456 }
 0x135   : > { %v1322_v32 = vpack.c.bf16 %v1457_v31, %v1457_v31 }
 0x136   : > { %699 = vxpose.xlu0.c.b16.start.end [1/1] (short) (narrow) %v638_v30, 16 }
 0x13f   : > { %807 = vrot.lane.b32.xlu0 %v1322_v32, %s1505_s19 }
 0x198   : > { %v647_v33 = vpop.trf.xlu0 }
 0x199   : > { %1353 = vmatmul.mubr.msk.bf16.vlgmr.msra.gmra.mrb[0].mxu1 %vm602_vm6, %v647_v33  ;;  %v804_v35 = vpop.permute.xlu1 %803 }
 0x19a   : > { %1357 = vmatpush3.bf16.msra.mxu1 %v1620_v20  ;;  %816 = vst.msk [vmem:[%s1606_s11] sm:$0xf] %vm815_vm7, %v804_v35  ;;  %1358 = vmatprep.mubr.msk.bf16.mxu1 %vm1504_vm5, %v1503_v34  ;;  %v635_v34 = vld [vmem:[#allocation3 + $0x10] sm:$0xff] }
 0x19c   : > { %v707_v37 = vpop.trf.xlu0 }
 0x19d   : > { %v806_v36 = vpop.permute.xlu1 %805 }
 0x19e   : > { %817 = vst.msk [vmem:[%s1606_s11 + $0x4] sm:$0xf] %vm815_vm7, %v806_v36 }
 0x1a1   : > { %1359 = vmatmul.mubr.msk.bf16.vlgmr.msra.gmra.mrb[4].mxu1 %vm602_vm6, %v707_v37  ;;  %v810_v38 = vpop.permute.xlu1 %809 }
 0x1a2   : > { %819 = vst.msk [vmem:[%s1606_s11 + $0xc] sm:$0xf] %vm815_vm7, %v810_v38 }
 0x1b1   : > { %v808_v39 = vpop.permute.xlu0 %807 }
 0x1b2   : > { %818 = vst.msk [vmem:[%s1606_s11 + $0x8] sm:$0xf] %vm815_vm7, %v808_v39 }
 0x1f0   : > { %v906_v1 = vpop.f32.mrb[0].mxu0 (!%p1302_p12) }
 0x1f1   : > { %v907_v2 = vadd.f32 (!%p1302_p12), %v1303_v0, %v906_v1  ;;  %v1372_v3 = vpop.f32.mrb[1].mxu0 (!%p1302_p12) }
 0x1f3   : > { %v1305_v4 = vmul.f32 (!%p1302_p12), -1.442695, %v907_v2 }
 0x1f5   : > { %1458 = vpow2.f32 (!%p1302_p12), %v1305_v4 }
 0x1ff   : > { %v1459_v5 = vpop.eup (!%p1302_p12), %1458 }
 0x200   : > { %v913_v6 = vadd.f32 (!%p1302_p12), 1.0, %v1459_v5 }
 0x202   : > { %1460 = vrcp.f32 (!%p1302_p12), %v913_v6 }
 0x20c   : > { %v1461_v11 = vpop.eup (!%p1302_p12), %1460 }
 0x20d   : > { %918 = vrot.lane.b32.xlu0 (!%p1302_p12), %v1461_v11, %s1509_s16  ;;  %v955_v12 = vrot.slane (!%p1302_p12), %v1461_v11, %v924_v9  ;;  %v966_v13 = vrot.slane (!%p1302_p12), %v1461_v11, %v935_v10  ;;  %v916_v14 = vsub.f32 (!%p1302_p12), 1.0, %v1461_v11 }
 0x20f   : > { %957 = vbcast.lane.b32.xlu1 (!%p1302_p12), %v955_v12, 256 }
 0x211   : > { %961 = vbcast.lane.b32.xlu0 (!%p1302_p12), %v955_v12, 264 }
 0x26c   : > { %v692_v41 = vpop.f32.mrb[0].mxu1 }
 0x26d   : > { %v759_v43 = vadd.f32 %v692_v41, %v633_v40  ;;  %v1354_v44 = vpop.f32.mrb[1].mxu1 }
 0x26e   : > { %v695_v45 = vpop.f32.mrb[2].mxu1 }
 0x26f   : > { %763 = vst.msk [vmem:[#allocation3] sm:$0xff] %vm491_vm2, %v759_v43  ;;  %v760_v20 = vadd.f32 %v695_v45, %v634_v42  ;;  %v1355_v46 = vpop.f32.mrb[3].mxu1 }
 0x271   : > { %764 = vst.msk [vmem:[#allocation3 + $0x8] sm:$0xff] %vm491_vm2, %v760_v20 }
 0x273   : > { %823 = sbr.rel (%p1302_p12) target bundleno = 778 (0x30a), region = 90 }
 0x274   : > { %v752_v47 = vpop.f32.mrb[4].mxu1 }
 0x275   : > { %v761_v49 = vadd.f32 %v752_v47, %v635_v34  ;;  %v1360_v50 = vpop.f32.mrb[5].mxu1 }
 0x276   : > { %v755_v51 = vpop.f32.mrb[6].mxu1  ;;  %v974_v22 = vld [vmem:[#allocation3] sm:$0xff] (!%p1302_p12) }
 0x277   : > { %765 = vst.msk [vmem:[#allocation3 + $0x10] sm:$0xff] %vm491_vm2, %v761_v49  ;;  %v762_v52 = vadd.f32 %v755_v51, %v636_v48  ;;  %v1361_v53 = vpop.f32.mrb[7].mxu1 }
 0x278   : > { %v975_v23 = vld [vmem:[#allocation3 + $0x8] sm:$0xff] (!%p1302_p12) }
 0x279   : > { %766 = vst.msk [vmem:[#allocation3 + $0x18] sm:$0xff] %vm491_vm2, %v762_v52 }
 0x27e   : > { %v976_v41 = vld [vmem:[#allocation3 + $0x10] sm:$0xff] }
 0x27f   : > { %v919_v15 = vpop.permute.xlu0 %918 }
 0x280   : > { %v921_v16 = vsub.f32 %v916_v14, %v919_v15  ;;  %v977_v42 = vld [vmem:[#allocation3 + $0x18] sm:$0xff] }
 0x281   : > { %v958_v19 = vpop.permute.xlu1 %957 }
 0x282   : > { %v925_v17 = vrot.slane %v921_v16, %v924_v9  ;;  %v936_v18 = vrot.slane %v921_v16, %v935_v10  ;;  %v978_v28 = vmul.f32 %v974_v22, %v958_v19 }
 0x283   : > { %v962_v21 = vpop.permute.xlu0 %961 }
 0x284   : > { %931 = vbcast.lane.b32.xlu1 %v925_v17, 264  ;;  %927 = vbcast.lane.b32.xlu0 %v925_v17, 256  ;;  %v979_v29 = vmul.f32 %v975_v23, %v962_v21 }
 0x288   : > { %938 = vbcast.lane.b32.xlu1 %v936_v18, 256  ;;  %942 = vbcast.lane.b32.xlu0 %v936_v18, 264 }
 0x28c   : > { %968 = vbcast.lane.b32.xlu1 %v966_v13, 256  ;;  %972 = vbcast.lane.b32.xlu0 %v966_v13, 264 }
 0x2f6   : > { %v932_v26 = vpop.permute.xlu1 %931  ;;  %v928_v27 = vpop.permute.xlu0 %927 }
 0x2f7   : > { %v949_v30 = vmul.f32 %v945_v24, %v932_v26  ;;  %v948_v31 = vmul.f32 %v944_v25, %v928_v27 }
 0x2f9   : > { %v983_v32 = vadd.f32 %v979_v29, %v949_v30  ;;  %v982_v33 = vadd.f32 %v978_v28, %v948_v31 }
 0x2fa   : > { %v939_v35 = vpop.permute.xlu1 %938  ;;  %v943_v36 = vpop.permute.xlu0 %942 }
 0x2fb   : > { %987 = vst.msk [vmem:[%s1742_s6 + $0x8] sm:$0xff] %vm491_vm2, %v983_v32  ;;  %v1325_v37 = vpack.c.bf16 %v983_v32, %v983_v32  ;;  %986 = vst.msk [vmem:[%s1742_s6] sm:$0xff] %vm491_vm2, %v982_v33  ;;  %v1324_v38 = vpack.c.bf16 %v982_v33, %v982_v33 }
 0x2fd   : > { %1008 = vst.msk [vmem:[%s1744_s8 + $0x4] sm:$0xf] %vm1006_vm9, %v1325_v37  ;;  %1007 = vst.msk [vmem:[%s1744_s8] sm:$0xf] %vm1006_vm9, %v1324_v38 }
 0x2fe   : > { %v969_v43 = vpop.permute.xlu1 %968  ;;  %v973_v44 = vpop.permute.xlu0 %972 }
 0x2ff   : > { %v980_v46 = vmul.f32 %v976_v41, %v969_v43  ;;  %v981_v34 = vmul.f32 %v977_v42, %v973_v44 }
 0x302   : > { %v946_v39 = vld [vmem:[%s1737_s1 + $0x10] sm:$0xff]  ;;  %v947_v40 = vld [vmem:[%s1737_s1 + $0x18] sm:$0xff] }
 0x303   : > { %v950_v45 = vmul.f32 %v946_v39, %v939_v35  ;;  %v951_v20 = vmul.f32 %v947_v40, %v943_v36 }
 0x305   : > { %v984_v47 = vadd.f32 %v980_v46, %v950_v45  ;;  %v985_v48 = vadd.f32 %v981_v34, %v951_v20 }
 0x307   : > { %988 = vst.msk [vmem:[%s1742_s6 + $0x10] sm:$0xff] %vm491_vm2, %v984_v47  ;;  %v1326_v49 = vpack.c.bf16 %v984_v47, %v984_v47  ;;  %989 = vst.msk [vmem:[%s1742_s6 + $0x18] sm:$0xff] %vm491_vm2, %v985_v48  ;;  %v1327_v50 = vpack.c.bf16 %v985_v48, %v985_v48 }
 0x309   : > { %1009 = vst.msk [vmem:[%s1744_s8 + $0x8] sm:$0xf] %vm1006_vm9, %v1326_v49  ;;  %1010 = vst.msk [vmem:[%s1744_s8 + $0xc] sm:$0xf] %vm1006_vm9, %v1327_v50 }
 0x30a PF: > { %1031 = sbr.rel (!%p1590_p6) target bundleno = 785 (0x311), region = 98  ;;  %s1328_s27 = sshll.u32 (%p1590_p6), %s1492_s29, 3  ;;  %v1051_v51 = vld [vmem:[%s1606_s11] sm:$0xff] (%p1590_p6)   ;;  %v1055_v52 = vld [vmem:[%s1606_s11 + $0x8] sm:$0xff] (%p1590_p6)  }
 0x30b   : > { %s1035_s16 = scalar_lea.vmem (%p1590_p6), %s1743_s7, %s1328_s27 }
 0x30c   : > { %1052 = vst [vmem:[%s1035_s16] sm:$0xff] (%p1590_p6), %v1051_v51   ;;  %1056 = vst [vmem:[%s1035_s16 + $0x20] sm:$0xff] (%p1590_p6), %v1055_v52  }
 0x311 PF: > { %s19_s9 = sadd.s32 1, %s1500_s9   ;;  %s1746_s27 = smov %s1488_s28 }
 0x312   : > { %p16_p13 = scmp.ge.s32.totalorder %s19_s9, 6   ;;  %s1747_s28 = smov %s1595_s15 }
 0x313   : > { %s1748_s29 = smov %s1496_s30  ;;  %s1749_s30 = smov %s1751_s10 }
 0x314   :  { %18 = sbr.rel (!%p16_p13) target bundleno = 3 (0x3), region = 205 }

// kernel: memory_gater.3
= control target key start
LH: loop header
LB: loop body
LE: loop exit
PB: predicated region body
PF: predicated region fallthrough
CT: control target
= control target key end

     0   :  { %s615_s9 = smov 0   ;;  %s617_s10 = smov 0   ;;  %s707_s0 = inlined_call_operand.vmem [shape: bf16[2,64,16], index: 0, kind: input, shape index: {}]   ;;  %s708_s1 = inlined_call_operand.vmem [shape: bf16[2,16,32], index: 1, kind: input, shape index: {}]   ;;  %s709_s2 = inlined_call_operand.vmem [shape: f32[2,64,32], index: 2, kind: output, shape index: {}]  }
   0x1   :  { %s619_s11 = smov 0  }
   0x2 LB: > { %s501_s12 = sadd.s32 4294967295, %s598_s11   ;;  %s632_s13 = sadd.s32 1, %s598_s11   ;;  %s598_s11 = sphi %s619_s11, %s713_s11   ;;  %s594_s10 = sphi %s617_s10, %s712_s10   ;;  %s590_s9 = sphi %s615_s9, %s711_s9  }
   0x3   : > { %s16_s14 = ssub.s32 %s598_s11, %s632_s13  ;;  %s19_s15 = sadd.s32 1, %s594_s10 }
   0x4   : > { %p17_p0 = scmp.eq.s32.totalorder %s16_s14, 0  ;;  %p26_p1 = scmp.ne.s32.totalorder %s594_s10, %s590_s9 }
   0x5   : > { %p27_p2 = scmp.eq.s32.totalorder %s598_s11, 0  ;;  %p77_p3 = scmp.eq.s32.totalorder %s501_s12, 1 }
   0x6   : > { %s643_s16 = scalar_select %p17_p0, %s594_s10, %s19_s15  }
   0x7   : > { %p28_p4 = por %p27_p2, %p26_p1  ;;  %p645_p5 = por %p77_p3, %p26_p1 }
   0x8   : > { %p504_p6 = scmp.ge.s32.totalorder %s598_s11, 2 }
   0xa   : > { %102 = sbr.rel (%p504_p6) target bundleno = 24 (0x18), region = 20 }
  0x11   : > { %105 = sbr.rel (!%p28_p4) target bundleno = 24 (0x18), region = 24  ;;  %s107_s18 = sand.u32 (%p28_p4), 1, %s594_s10  }
  0x12   : > { %s526_s19 = sshll.u32 (%p28_p4), %s598_s11, 4  ;;  %s505_s20 = sshll.u32 (%p28_p4), %s107_s18, 5 }
  0x13   : > { %s112_s23 = scalar_lea.vmem (%p28_p4), %s707_s0, %s526_s19  ;;  %s109_s24 = scalar_lea.vmem (%p28_p4), [#allocation2], %s505_s20 }
  0x14   : > { %v128_v0 = vld [vmem:[%s112_s23] sm:$0xff] (%p28_p4)   ;;  %v132_v1 = vld [vmem:[%s112_s23 + $0x8] sm:$0xff] (%p28_p4)  }
  0x15   : > { %v136_v2 = vld [vmem:[%s112_s23 + $0x20] sm:$0xff] (%p28_p4)   ;;  %129 = vst [vmem:[%s109_s24] sm:$0xff] (%p28_p4), %v128_v0   ;;  %133 = vst [vmem:[%s109_s24 + $0x8] sm:$0xff] (%p28_p4), %v132_v1   ;;  %v140_v3 = vld [vmem:[%s112_s23 + $0x28] sm:$0xff] (%p28_p4)  }
  0x16   : > { %137 = vst [vmem:[%s109_s24 + $0x10] sm:$0xff] (%p28_p4), %v136_v2   ;;  %141 = vst [vmem:[%s109_s24 + $0x18] sm:$0xff] (%p28_p4), %v140_v3  }
  0x18 PF: > { %p508_p7 = scmp.ge.s32.totalorder %s598_s11, 1  ;;  %p181_p8 = scmp.lt.s32.totalorder %s598_s11, 3 }
  0x1a   : > { %p182_p9 = pnand %p508_p7, %p181_p8 }
  0x1b   : > { %v570_v4 = vld [vmem:[%s708_s1] sm:$0xff] (!%p182_p9)   ;;  %s188_s27 = sand.u32 (!%p182_p9), 1, %s590_s9   ;;  %v571_v5 = vld [vmem:[%s708_s1 + $0x8] sm:$0xff] (!%p182_p9)   ;;  %vm239_vm0 = vcmask (!%p182_p9), 130048   ;;  %vm366_vm1 = vcmask (!%p182_p9), 261120  }
  0x1c   : > { %185 = sbr.rel (%p182_p9) target bundleno = 257 (0x101), region = 65  ;;  %s509_s30 = sshll.u32 (!%p182_p9), %s188_s27, 5  ;;  %534 = vmatprep.subr.bf16.mxu0 (!%p182_p9), %v570_v4  ;;  %540 = vmatprep.subr.bf16.mxu1 (!%p182_p9), %v571_v5 }
  0x1d   : > { %535 = vmatpush3.bf16.msra.mxu0 (!%p182_p9), %v570_v4  ;;  %s190_s3 = scalar_lea.vmem (!%p182_p9), [#allocation2], %s509_s30  ;;  %541 = vmatpush3.bf16.msra.mxu1 (!%p182_p9), %v571_v5  ;;  %s510_s4 = sshll.u32 (!%p182_p9), %s188_s27, 6 }
  0x1e   : > { %v572_v6 = vld [vmem:[%s190_s3] sm:$0xff] (!%p182_p9)   ;;  %v573_v7 = vld [vmem:[%s190_s3 + $0x10] sm:$0xff] (!%p182_p9)   ;;  %v574_v8 = vld [vmem:[%s190_s3 + $0x8] sm:$0xff] (!%p182_p9)   ;;  %s664_s5 = scalar_lea.vmem (!%p182_p9), [#allocation3], %s510_s4 }
  0x1f   : > { %536 = vmatprep.mubr.msk.bf16.mxu0 (!%p182_p9), %vm239_vm0, %v572_v6  ;;  %542 = vmatprep.mubr.msk.bf16.mxu1 (!%p182_p9), %vm239_vm0, %v573_v7  ;;  %v575_v9 = vld [vmem:[%s190_s3 + $0x18] sm:$0xff] (!%p182_p9)  }
  0x20   : > { %537 = vmatmul.mubr.msk.bf16.vlgmr.msra.gmra.mrb[0].mxu0 (!%p182_p9), %vm239_vm0, %v574_v8  ;;  %543 = vmatmul.mubr.msk.bf16.vlgmr.msra.gmra.mrb[0].mxu1 (!%p182_p9), %vm239_vm0, %v575_v9 }
  0x23   : > { %s527_s6 = sshll.u32 (%p645_p5), %s501_s12, 5 }
  0x24   : > { %s384_s9 = scalar_lea.vmem (%p645_p5), %s709_s2, %s527_s6 }
  0xf1   : > { %381 = sbr.rel (!%p645_p5) target bundleno = 257 (0x101), region = 73 }
  0xf3   : > { %v538_v10 = vpop.f32.mrb[0].mxu0  ;;  %v544_v11 = vpop.f32.mrb[0].mxu1 }
  0xf4   : > { %369 = vst.msk [vmem:[%s664_s5 + $0x10] sm:$0xff] %vm366_vm1, %v538_v10  ;;  %v280_v12 = vpop.f32.mrb[1].mxu0  ;;  %373 = vst.msk [vmem:[%s664_s5 + $0x30] sm:$0xff] %vm366_vm1, %v544_v11  ;;  %v351_v13 = vpop.f32.mrb[1].mxu1 }
  0xf5   : > { %367 = vst.msk [vmem:[%s664_s5] sm:$0xff] %vm366_vm1, %v280_v12  ;;  %v539_v14 = vpop.f32.mrb[2].mxu0  ;;  %371 = vst.msk [vmem:[%s664_s5 + $0x20] sm:$0xff] %vm366_vm1, %v351_v13  ;;  %v545_v15 = vpop.f32.mrb[2].mxu1 }
  0xf6   : > { %370 = vst.msk [vmem:[%s664_s5 + $0x18] sm:$0xff] %vm366_vm1, %v539_v14  ;;  %v283_v16 = vpop.f32.mrb[3].mxu0  ;;  %374 = vst.msk [vmem:[%s664_s5 + $0x38] sm:$0xff] %vm366_vm1, %v545_v15  ;;  %v354_v17 = vpop.f32.mrb[3].mxu1 }
  0xf7   : > { %368 = vst.msk [vmem:[%s664_s5 + $0x8] sm:$0xff] %vm366_vm1, %v283_v16  ;;  %372 = vst.msk [vmem:[%s664_s5 + $0x28] sm:$0xff] %vm366_vm1, %v354_v17 }
  0xfb   : > { %v430_v20 = vld [vmem:[%s664_s5 + $0x10] sm:$0xff] }
  0xfc   : > { %v426_v18 = vld [vmem:[%s664_s5] sm:$0xff]  ;;  %431 = vst [vmem:[%s384_s9 + $0x10] sm:$0xff] %v430_v20  ;;  %v438_v24 = vld [vmem:[%s664_s5 + $0x30] sm:$0xff] }
  0xfd   : > { %v432_v21 = vld [vmem:[%s664_s5 + $0x18] sm:$0xff]  ;;  %v434_v22 = vld [vmem:[%s664_s5 + $0x20] sm:$0xff]  ;;  %427 = vst [vmem:[%s384_s9] sm:$0xff] %v426_v18  ;;  %439 = vst [vmem:[%s384_s9 + $0x50] sm:$0xff] %v438_v24 }
  0xfe   : > { %v428_v19 = vld [vmem:[%s664_s5 + $0x8] sm:$0xff]  ;;  %433 = vst [vmem:[%s384_s9 + $0x18] sm:$0xff] %v432_v21  ;;  %435 = vst [vmem:[%s384_s9 + $0x40] sm:$0xff] %v434_v22  ;;  %v440_v25 = vld [vmem:[%s664_s5 + $0x38] sm:$0xff] }
  0xff   : > { %v436_v23 = vld [vmem:[%s664_s5 + $0x28] sm:$0xff]  ;;  %429 = vst [vmem:[%s384_s9 + $0x8] sm:$0xff] %v428_v19  ;;  %441 = vst [vmem:[%s384_s9 + $0x58] sm:$0xff] %v440_v25 }
 0x100   : > { %437 = vst [vmem:[%s384_s9 + $0x48] sm:$0xff] %v436_v23 }
 0x101 PF: > { %p9_p10 = scmp.ge.s32.totalorder %s632_s13, 4   ;;  %s711_s9 = smov %s594_s10 }
 0x102   : > { %s712_s10 = smov %s643_s16  ;;  %s713_s11 = smov %s632_s13 }
 0x103   :  { %11 = sbr.rel (!%p9_p10) target bundleno = 2 (0x2), region = 142 }

// kernel: memory_gater.2
= control target key start
LH: loop header
LB: loop body
LE: loop exit
PB: predicated region body
PF: predicated region fallthrough
CT: control target
= control target key end

     0   :  { %s1555_s27 = smov 0   ;;  %s1557_s28 = smov 0   ;;  %s1736_s0 = inlined_call_operand.vmem [shape: f32[2,64,32], index: 0, kind: input, shape index: {}]   ;;  %s1737_s1 = inlined_call_operand.vmem [shape: f32[2,16,32], index: 1, kind: input, shape index: {}, may-alias: {1,6}]   ;;  %s1738_s2 = inlined_call_operand.vmem [shape: bf16[32,32], index: 2, kind: input, shape index: {}]   ;;  %s1739_s3 = inlined_call_operand.vmem [shape: f32[1,32], index: 3, kind: input, shape index: {}]   ;;  %s1740_s4 = inlined_call_operand.vmem [shape: f32[32,32], index: 4, kind: input, shape index: {}]   ;;  %s1741_s5 = inlined_call_operand.vmem [shape: f32[1,32], index: 5, kind: input, shape index: {}]   ;;  %s1742_s6 = inlined_call_operand.vmem [shape: f32[2,16,32], index: 6, kind: output, shape index: {0}, may-alias: {1,6}]   ;;  %s1743_s7 = inlined_call_operand.vmem [shape: bf16[2,64,16], index: 7, kind: output, shape index: {1}]   ;;  %s1744_s8 = inlined_call_operand.vmem [shape: bf16[2,16,32], index: 8, kind: output, shape index: {2}]  }
   0x1   :  { %s1559_s29 = smov 0   ;;  %s1561_s30 = smov 0  }
   0x2   :  { %s1563_s9 = smov 0  }
   0x3 LB: > { %s28_s10 = sadd.s32 1, %s1496_s30  ;;  %s1271_s11 = sadd.s32 4294967295, %s1500_s9   ;;  %s1500_s9 = sphi %s1563_s9, %s19_s9   ;;  %s1496_s30 = sphi %s1561_s30, %s1749_s30   ;;  %s1492_s29 = sphi %s1559_s29, %s1748_s29   ;;  %s1488_s28 = sphi %s1557_s28, %s1747_s28   ;;  %s1484_s27 = sphi %s1555_s27, %s1746_s27  }
   0x4   : > { %p29_p0 = scmp.ge.s32.totalorder %s28_s10, 4  ;;  %p45_p1 = scmp.ne.s32.totalorder %s1488_s28, %s1484_s27 }
   0x5   : > { %p46_p2 = scmp.eq.s32.totalorder %s1500_s9, 0  ;;  %p233_p4 = scmp.eq.s32.totalorder %s1271_s11, 3 }
   0x6   : > { %s1751_s10 = smov (%p29_p0, %s28_s10), 0  ;;  %s38_s13 = sadd.s32 1, %s1488_s28 }
   0x7   : > { %p47_p3 = por %p46_p2, %p45_p1  ;;  %s35_s12 = ssub.s32 %s1496_s30, %s1751_s10 }
   0x8   : > { %p36_p5 = scmp.eq.s32.totalorder %s35_s12, 0  ;;  %p1590_p6 = por %p233_p4, %p45_p1 }
   0x9   : > { %p1279_p7 = scmp.ge.s32.totalorder %s1500_s9, 4 }
   0xa   : > { %s1595_s15 = scalar_select %p36_p5, %s1488_s28, %s38_s13  }
   0xb   : > { %316 = sbr.rel (%p1279_p7) target bundleno = 25 (0x19), region = 36 }
  0x12   : > { %319 = sbr.rel (!%p47_p3) target bundleno = 25 (0x19), region = 40  ;;  %s321_s16 = sand.u32 (%p47_p3), 1, %s1488_s28  }
  0x13   : > { %s1319_s17 = sshll.u32 (%p47_p3), %s1496_s30, 4  ;;  %s1280_s18 = sshll.u32 (%p47_p3), %s321_s16, 5 }
  0x14   : > { %s326_s21 = scalar_lea.vmem (%p47_p3), %s1736_s0, %s1319_s17  ;;  %s323_s22 = scalar_lea.vmem (%p47_p3), [#allocation4], %s1280_s18 }
  0x15   : > { %v360_v0 = vld [vmem:[%s326_s21] sm:$0xff] (%p47_p3)  ;;  %v362_v1 = vld [vmem:[%s326_s21 + $0x8] sm:$0xff] (%p47_p3) }
  0x16   : > { %v364_v2 = vld [vmem:[%s326_s21 + $0x40] sm:$0xff] (%p47_p3)  ;;  %361 = vst [vmem:[%s323_s22] sm:$0xff] (%p47_p3), %v360_v0  ;;  %363 = vst [vmem:[%s323_s22 + $0x8] sm:$0xff] (%p47_p3), %v362_v1  ;;  %v366_v3 = vld [vmem:[%s326_s21 + $0x48] sm:$0xff] (%p47_p3) }
  0x17   : > { %365 = vst [vmem:[%s323_s22 + $0x10] sm:$0xff] (%p47_p3), %v364_v2  ;;  %367 = vst [vmem:[%s323_s22 + $0x18] sm:$0xff] (%p47_p3), %v366_v3 }
  0x19 PF: > { %p1283_p8 = scmp.ge.s32.totalorder %s1500_s9, 1  ;;  %p372_p9 = scmp.lt.s32.totalorder %s1500_s9, 5 }
  0x1b   : > { %p373_p10 = pnand %p1283_p8, %p372_p9 }
  0x1c   : > { %s379_s23 = sand.u32 (!%p373_p10), 1, %s1484_s27   ;;  %p1286_p11 = scmp.ne.s32.totalorder (!%p373_p10), %s1492_s29, 0 }
  0x1d   : > { %376 = sbr.rel (%p373_p10) target bundleno = 785 (0x311), region = 78  ;;  %s1284_s24 = sshll.u32 (!%p373_p10), %s379_s23, 5 }
  0x1e   : > { %s1285_s25 = sshll.u32 (!%p373_p10), %s379_s23, 4  ;;  %s381_s26 = scalar_lea.vmem (!%p373_p10), [#allocation4], %s1284_s24 }
  0x1f   : > { %v475_v4 = vld [vmem:[%s381_s26] sm:$0xff] (!%p373_p10)  ;;  %v476_v5 = vld [vmem:[%s381_s26 + $0x8] sm:$0xff] (!%p373_p10)  ;;  %v477_v6 = vld [vmem:[%s381_s26 + $0x10] sm:$0xff] (!%p373_p10)  ;;  %s1606_s11 = scalar_lea.vmem (!%p373_p10), [#allocation5], %s1285_s25 }
  0x20   : > { %v478_v7 = vld [vmem:[%s381_s26 + $0x18] sm:$0xff] (!%p373_p10) }
  0x24   : > { %482 = sbr.rel (%p1286_p11) target bundleno = 43 (0x2b), region = 86  ;;  %vm483_vm0 = vcmask (!%p1286_p11), 254976   ;;  %vm485_vm1 = vcmask (!%p1286_p11), 261120   ;;  %v1502_v8 = vmov (!%p1286_p11), 0.0  }
  0x25   : > { %484 = vst.msk [vmem:[#allocation2] sm:$0x3] (!%p1286_p11), %vm483_vm0, %v1502_v8 }
  0x26   : > { %486 = vst.msk [vmem:[#allocation3] sm:$0xff] (!%p1286_p11), %vm485_vm1, %v1502_v8  ;;  %487 = vst.msk [vmem:[#allocation3 + $0x8] sm:$0xff] (!%p1286_p11), %vm485_vm1, %v1502_v8 }
  0x27   : > { %488 = vst.msk [vmem:[#allocation3 + $0x10] sm:$0xff] (!%p1286_p11), %vm485_vm1, %v1502_v8  ;;  %489 = vst.msk [vmem:[#allocation3 + $0x18] sm:$0xff] (!%p1286_p11), %vm485_vm1, %v1502_v8 }
  0x2b PF: > { %v1428_v9 = vld [vmem:[%s1738_s2] sm:$0xff]   ;;  %vm491_vm2 = vcmask 261120   ;;  %v518_v10 = vpack.c.bf16 %v476_v5, %v475_v4  ;;  %v1429_v11 = vld [vmem:[%s1738_s2 + $0x8] sm:$0xff]   ;;  %v1620_v20 = vpack.c.bf16 %v478_v7, %v477_v6  ;;  %vm512_vm3 = vcmask 1041409   ;;  %s1505_s19 = smov 112   ;;  %p1302_p12 = scmp.ne.s32.totalorder %s1492_s29, 3 }
  0x2c   : > { %v492_v12 = vsel %vm491_vm2, %v475_v4, 0.0  ;;  %1342 = vmatprep.subr.bf16.mxu0 %v1428_v9  ;;  %v493_v13 = vsel %vm491_vm2, %v476_v5, 0.0  ;;  %v501_v14 = vsel %vm491_vm2, %v477_v6, 0.0  ;;  %v502_v15 = vsel %vm491_vm2, %v478_v7, 0.0  ;;  %v490_v29 = vld [vmem:[#allocation2] sm:$0x3] }
  0x2d   : > { %1346 = vmatprep.mubr.msk.bf16.mxu0 %vm491_vm2, %v518_v10  ;;  %1343 = vmatpush3.bf16.msra.mxu0 %v1428_v9  ;;  %v494_v16 = vadd.f32 %v493_v13, %v492_v12  ;;  %v503_v17 = vadd.f32 %v502_v15, %v501_v14  ;;  %vm516_vm4 = vcmask 254976   ;;  %v1503_v34 = vmov 0.0   ;;  %v1291_v35 = vld [vmem:[%s1739_s3] ss:$0 sm:$0xff]  ;;  %s1509_s16 = smov (!%p1302_p12), 112  }
  0x2e   : > { %1344 = vmatprep.subr.bf16.mxu0 %v1429_v11  ;;  %1350 = vmatprep.subr.bf16.mxu1 %v1503_v34  ;;  %vm1504_vm5 = vmmov 0   ;;  %vm602_vm6 = vcmask 130048   ;;  %vm815_vm7 = vcmask 125952   ;;  %vm1507_vm8 = vmmov (!%p1302_p12), 0  }
  0x2f   : > { %v495_v18 = vrot.slane %v494_v16, 4  ;;  %v504_v19 = vrot.slane %v503_v17, 4  ;;  %1352 = vmatprep.mubr.msk.bf16.mxu1 %vm1504_vm5, %v1503_v34  ;;  %1351 = vmatpush3.bf16.msra.mxu1 %v518_v10  ;;  %vm1006_vm9 = vcmask (!%p1302_p12), 257024  }
  0x30   : > { %1356 = vmatprep.subr.bf16.mxu1 %v1503_v34 }
  0x31   : > { %1345 = vmatpush3.bf16.msra.mxu0 %v1429_v11  ;;  %v496_v21 = vadd.f32 %v495_v18, %v494_v16  ;;  %v505_v22 = vadd.f32 %v504_v19, %v503_v17 }
  0x33   : > { %v497_v23 = vrot.slane %v496_v21, 2  ;;  %v506_v24 = vrot.slane %v505_v22, 2 }
  0x34   : > { %1347 = vmatmul.mubr.msk.bf16.vlgmr.msra.gmra.mrb[0].mxu0 %vm491_vm2, %v1620_v20 }
  0x35   : > { %v498_v25 = vadd.f32 %v497_v23, %v496_v21  ;;  %v507_v26 = vadd.f32 %v506_v24, %v505_v22 }
  0x37   : > { %v499_v27 = vrot.slane %v498_v25, 1  ;;  %v508_v28 = vrot.slane %v507_v26, 1 }
  0x39   : > { %v500_v30 = vadd.f32 %v499_v27, %v498_v25  ;;  %v509_v31 = vadd.f32 %v508_v28, %v507_v26 }
  0x3b   : > { %v513_v32 = vsel %vm512_vm3, %v509_v31, %v500_v30 }
  0x3c   : > { %v515_v33 = vadd.f32 %v513_v32, %v490_v29 }
  0x3e   : > { %517 = vst.msk [vmem:[#allocation2] sm:$0x3] %vm516_vm4, %v515_v33 }
 0x107   : > { %v1348_v36 = vpop.f32.mrb[0].mxu0 }
 0x108   : > { %v600_v37 = vadd.f32 %v1348_v36, %v1291_v35  ;;  %v576_v38 = vpop.f32.mrb[1].mxu0 }
 0x109   : > { %v598_v39 = vadd.f32 %v1291_v35, %v576_v38  ;;  %v1349_v40 = vpop.f32.mrb[2].mxu0 }
 0x10a   : > { %v604_v41 = vsel %vm602_vm6, %v600_v37, -inf  ;;  %v601_v42 = vadd.f32 %v1349_v40, %v1291_v35  ;;  %v579_v43 = vpop.f32.mrb[3].mxu0  ;;  %v1296_v2 = vmul.f32 -1.442695, %v600_v37  ;;  %v633_v40 = vld [vmem:[#allocation3] sm:$0xff] }
 0x10b   : > { %v603_v44 = vsel %vm602_vm6, %v598_v39, -inf  ;;  %v1294_v45 = vmul.f32 -1.442695, %v598_v39  ;;  %v599_v46 = vadd.f32 %v1291_v35, %v579_v43 }
 0x10c   : > { %v605_v47 = vmax.f32 %v603_v44, %v604_v41  ;;  %v607_v48 = vsel %vm602_vm6, %v601_v42, -inf  ;;  %v1297_v49 = vmul.f32 -1.442695, %v601_v42 }
 0x10d   : > { %1430 = vpow2.f32 %v1294_v45  ;;  %v606_v50 = vsel %vm602_vm6, %v599_v46, -inf  ;;  %v1295_v51 = vmul.f32 -1.442695, %v599_v46 }
 0x10e   : > { %v609_v52 = vsub.f32 %v598_v39, %v605_v47  ;;  %v611_v53 = vsub.f32 %v600_v37, %v605_v47  ;;  %1432 = vpow2.f32 %v1297_v49  ;;  %v608_v54 = vmax.f32 %v606_v50, %v607_v48  ;;  %v636_v48 = vld [vmem:[#allocation3 + $0x18] sm:$0xff] }
 0x10f   : > { %1434 = vpow2.f32 %v1295_v51 }
 0x110   : > { %v613_v55 = vmul.f32 1.442695, %v609_v52  ;;  %v617_v56 = vmul.f32 1.442695, %v611_v53  ;;  %v610_v57 = vsub.f32 %v599_v46, %v608_v54  ;;  %v612_v58 = vsub.f32 %v601_v42, %v608_v54  ;;  %v634_v42 = vld [vmem:[#allocation3 + $0x8] sm:$0xff]  ;;  %v826_v54 = vld [vmem:[%s1740_s4] sm:$0xff] (!%p1302_p12) }
 0x112   : > { %1436 = vpow2.f32 %v613_v55  ;;  %v615_v59 = vmul.f32 1.442695, %v610_v57  ;;  %v619_v60 = vmul.f32 1.442695, %v612_v58  ;;  %v827_v55 = vld [vmem:[%s1740_s4 + $0x8] sm:$0xff] (!%p1302_p12)  ;;  %v1506_v57 = vmov (!%p1302_p12), 0.0|0.0  }
 0x113   : > { %1438 = vpow2.f32 %v617_v56  ;;  %v828_v56 = vld [vmem:[%s1740_s4 + $0x10] sm:$0xff] (!%p1302_p12)  ;;  %1373 = vmatprep.subr.bf16.mxu0 (!%p1302_p12), %v1506_v57  ;;  %v1374_v58 = vpack.c.bf16 (!%p1302_p12), %v827_v55, %v826_v54 }
 0x114   : > { %1440 = vpow2.f32 %v615_v59  ;;  %v829_v59 = vld [vmem:[%s1740_s4 + $0x18] sm:$0xff] (!%p1302_p12) }
 0x115   : > { %1442 = vpow2.f32 %v619_v60  ;;  %v1508_v60 = vmov (!%p1302_p12), 0.0   ;;  %1375 = vmatpush3.bf16.msra.mxu0 (!%p1302_p12), %v1374_v58 }
 0x116   : > { %1370 = vmatprep.mubr.msk.f32.mxu0 (!%p1302_p12), %vm1507_vm8, %v1508_v60  ;;  %1376 = vmatprep.subr.bf16.mxu0 (!%p1302_p12), %v1506_v57 }
 0x117   : > { %v1431_v61 = vpop.eup %1430 }
 0x118   : > { %v1433_v62 = vpop.eup %1432  ;;  %v779_v63 = vadd.f32 1.0, %v1431_v61  ;;  %v1377_v61 = vpack.c.bf16 (!%p1302_p12), %v829_v59, %v828_v56 }
 0x119   : > { %v1435_v0 = vpop.eup %1434  ;;  %v782_v4 = vadd.f32 1.0, %v1433_v62  ;;  %v824_v62 = vld [vmem:[#allocation2] sm:$0x3] (!%p1302_p12) }
 0x11a   : > { %1444 = vrcp.f32 %v779_v63  ;;  %v780_v1 = vadd.f32 1.0, %v1435_v0  ;;  %v825_v63 = vmul.f32 (!%p1302_p12), 0.015625, %v824_v62  ;;  %1378 = vmatpush3.bf16.msra.mxu0 (!%p1302_p12), %v1377_v61  ;;  %v1303_v0 = vld [vmem:[%s1741_s5] ss:$0 sm:$0xff] (!%p1302_p12) }
 0x11c   : > { %v1437_v3 = vpop.eup %1436  ;;  %1446 = vrcp.f32 %v780_v1 }
 0x11d   : > { %v1439_v5 = vpop.eup %1438  ;;  %v621_v6 = vsel %vm602_vm6, %v1437_v3, 0.0  ;;  %1448 = vpow2.f32 %v1296_v2  ;;  %1371 = vmatmul.mubr.msk.f32.vlgmr.msra.gmra.mrb[0].mxu0 (!%p1302_p12), %vm491_vm2, %v825_v63 }
 0x11e   : > { %v1441_v7 = vpop.eup %1440  ;;  %v622_v8 = vsel %vm602_vm6, %v1439_v5, 0.0  ;;  %1450 = vrcp.f32 %v782_v4 }
 0x11f   : > { %v1443_v9 = vpop.eup %1442  ;;  %v623_v10 = vadd.f32 %v622_v8, %v621_v6  ;;  %v624_v11 = vsel %vm602_vm6, %v1441_v7, 0.0 }
 0x120   : > { %v625_v12 = vsel %vm602_vm6, %v1443_v9, 0.0 }
 0x121   : > { %v626_v13 = vadd.f32 %v625_v12, %v624_v11  ;;  %1452 = vrcp.f32 %v623_v10 }
 0x123   : > { %1454 = vrcp.f32 %v626_v13 }
 0x124   : > { %v1445_v14 = vpop.eup %1444 }
 0x125   : > { %v1320_v15 = vpack.c.bf16 %v1445_v14, %v1445_v14 }
 0x126   : > { %v1447_v16 = vpop.eup %1446 }
 0x127   : > { %803 = vrot.lane.b32.xlu1 %v1320_v15, %s1505_s19  ;;  %v1449_v17 = vpop.eup %1448  ;;  %v1321_v18 = vpack.c.bf16 %v1447_v16, %v1447_v16 }
 0x128   : > { %v1451_v19 = vpop.eup %1450  ;;  %v781_v24 = vadd.f32 1.0, %v1449_v17 }
 0x129   : > { %v1323_v26 = vpack.c.bf16 %v1451_v19, %v1451_v19 }
 0x12a   : > { %1456 = vrcp.f32 %v781_v24  ;;  %v945_v24 = vld [vmem:[%s1737_s1 + $0x8] sm:$0xff] (!%p1302_p12) }
 0x12b   : > { %v1453_v21 = vpop.eup %1452  ;;  %805 = vrot.lane.b32.xlu1 %v1321_v18, %s1505_s19 }
 0x12c   : > { %v629_v22 = vmul.f32 %v1453_v21, %v1437_v3  ;;  %v631_v23 = vmul.f32 %v1453_v21, %v1439_v5 }
 0x12d   : > { %v1455_v25 = vpop.eup %1454 }
 0x12e   : > { %v630_v27 = vmul.f32 %v1455_v25, %v1441_v7  ;;  %v632_v28 = vmul.f32 %v1455_v25, %v1443_v9  ;;  %v922_v7 = vlaneseq (!%p1302_p12)  ;;  %v944_v25 = vld [vmem:[%s1737_s1] sm:$0xff] (!%p1302_p12) }
 0x12f   : > { %809 = vrot.lane.b32.xlu1 %v1323_v26, %s1505_s19 }
 0x130   : > { %v637_v29 = vpack.c.bf16 %v630_v27, %v629_v22  ;;  %v638_v30 = vpack.c.bf16 %v632_v28, %v631_v23  ;;  %v923_v8 = vshrl.u32 (!%p1302_p12), %v922_v7, 7 }
 0x132   : > { %639 = vxpose.xlu0.c.b16.start.end [1/1] (short) (narrow) %v637_v29, 16  ;;  %v924_v9 = vsub.s32 (!%p1302_p12), 0, %v923_v8  ;;  %v935_v10 = vsub.s32 (!%p1302_p12), 1, %v923_v8 }
 0x134   : > { %v1457_v31 = vpop.eup %1456 }
 0x135   : > { %v1322_v32 = vpack.c.bf16 %v1457_v31, %v1457_v31 }
 0x136   : > { %699 = vxpose.xlu0.c.b16.start.end [1/1] (short) (narrow) %v638_v30, 16 }
 0x13f   : > { %807 = vrot.lane.b32.xlu0 %v1322_v32, %s1505_s19 }
 0x198   : > { %v647_v33 = vpop.trf.xlu0 }
 0x199   : > { %1353 = vmatmul.mubr.msk.bf16.vlgmr.msra.gmra.mrb[0].mxu1 %vm602_vm6, %v647_v33  ;;  %v804_v35 = vpop.permute.xlu1 %803 }
 0x19a   : > { %1357 = vmatpush3.bf16.msra.mxu1 %v1620_v20  ;;  %816 = vst.msk [vmem:[%s1606_s11] sm:$0xf] %vm815_vm7, %v804_v35  ;;  %1358 = vmatprep.mubr.msk.bf16.mxu1 %vm1504_vm5, %v1503_v34  ;;  %v635_v34 = vld [vmem:[#allocation3 + $0x10] sm:$0xff] }
 0x19c   : > { %v707_v37 = vpop.trf.xlu0 }
 0x19d   : > { %v806_v36 = vpop.permute.xlu1 %805 }
 0x19e   : > { %817 = vst.msk [vmem:[%s1606_s11 + $0x4] sm:$0xf] %vm815_vm7, %v806_v36 }
 0x1a1   : > { %1359 = vmatmul.mubr.msk.bf16.vlgmr.msra.gmra.mrb[4].mxu1 %vm602_vm6, %v707_v37  ;;  %v810_v38 = vpop.permute.xlu1 %809 }
 0x1a2   : > { %819 = vst.msk [vmem:[%s1606_s11 + $0xc] sm:$0xf] %vm815_vm7, %v810_v38 }
 0x1b1   : > { %v808_v39 = vpop.permute.xlu0 %807 }
 0x1b2   : > { %818 = vst.msk [vmem:[%s1606_s11 + $0x8] sm:$0xf] %vm815_vm7, %v808_v39 }
 0x1f0   : > { %v906_v1 = vpop.f32.mrb[0].mxu0 (!%p1302_p12) }
 0x1f1   : > { %v907_v2 = vadd.f32 (!%p1302_p12), %v1303_v0, %v906_v1  ;;  %v1372_v3 = vpop.f32.mrb[1].mxu0 (!%p1302_p12) }
 0x1f3   : > { %v1305_v4 = vmul.f32 (!%p1302_p12), -1.442695, %v907_v2 }
 0x1f5   : > { %1458 = vpow2.f32 (!%p1302_p12), %v1305_v4 }
 0x1ff   : > { %v1459_v5 = vpop.eup (!%p1302_p12), %1458 }
 0x200   : > { %v913_v6 = vadd.f32 (!%p1302_p12), 1.0, %v1459_v5 }
 0x202   : > { %1460 = vrcp.f32 (!%p1302_p12), %v913_v6 }
 0x20c   : > { %v1461_v11 = vpop.eup (!%p1302_p12), %1460 }
 0x20d   : > { %918 = vrot.lane.b32.xlu0 (!%p1302_p12), %v1461_v11, %s1509_s16  ;;  %v955_v12 = vrot.slane (!%p1302_p12), %v1461_v11, %v924_v9  ;;  %v966_v13 = vrot.slane (!%p1302_p12), %v1461_v11, %v935_v10  ;;  %v916_v14 = vsub.f32 (!%p1302_p12), 1.0, %v1461_v11 }
 0x20f   : > { %957 = vbcast.lane.b32.xlu1 (!%p1302_p12), %v955_v12, 256 }
 0x211   : > { %961 = vbcast.lane.b32.xlu0 (!%p1302_p12), %v955_v12, 264 }
 0x26c   : > { %v692_v41 = vpop.f32.mrb[0].mxu1 }
 0x26d   : > { %v759_v43 = vadd.f32 %v692_v41, %v633_v40  ;;  %v1354_v44 = vpop.f32.mrb[1].mxu1 }
 0x26e   : > { %v695_v45 = vpop.f32.mrb[2].mxu1 }
 0x26f   : > { %763 = vst.msk [vmem:[#allocation3] sm:$0xff] %vm491_vm2, %v759_v43  ;;  %v760_v20 = vadd.f32 %v695_v45, %v634_v42  ;;  %v1355_v46 = vpop.f32.mrb[3].mxu1 }
 0x271   : > { %764 = vst.msk [vmem:[#allocation3 + $0x8] sm:$0xff] %vm491_vm2, %v760_v20 }
 0x273   : > { %823 = sbr.rel (%p1302_p12) target bundleno = 778 (0x30a), region = 90 }
 0x274   : > { %v752_v47 = vpop.f32.mrb[4].mxu1 }
 0x275   : > { %v761_v49 = vadd.f32 %v752_v47, %v635_v34  ;;  %v1360_v50 = vpop.f32.mrb[5].mxu1 }
 0x276   : > { %v755_v51 = vpop.f32.mrb[6].mxu1  ;;  %v974_v22 = vld [vmem:[#allocation3] sm:$0xff] (!%p1302_p12) }
 0x277   : > { %765 = vst.msk [vmem:[#allocation3 + $0x10] sm:$0xff] %vm491_vm2, %v761_v49  ;;  %v762_v52 = vadd.f32 %v755_v51, %v636_v48  ;;  %v1361_v53 = vpop.f32.mrb[7].mxu1 }
 0x278   : > { %v975_v23 = vld [vmem:[#allocation3 + $0x8] sm:$0xff] (!%p1302_p12) }
 0x279   : > { %766 = vst.msk [vmem:[#allocation3 + $0x18] sm:$0xff] %vm491_vm2, %v762_v52 }
 0x27e   : > { %v976_v41 = vld [vmem:[#allocation3 + $0x10] sm:$0xff] }
 0x27f   : > { %v919_v15 = vpop.permute.xlu0 %918 }
 0x280   : > { %v921_v16 = vsub.f32 %v916_v14, %v919_v15  ;;  %v977_v42 = vld [vmem:[#allocation3 + $0x18] sm:$0xff] }
 0x281   : > { %v958_v19 = vpop.permute.xlu1 %957 }
 0x282   : > { %v925_v17 = vrot.slane %v921_v16, %v924_v9  ;;  %v936_v18 = vrot.slane %v921_v16, %v935_v10  ;;  %v978_v28 = vmul.f32 %v974_v22, %v958_v19 }
 0x283   : > { %v962_v21 = vpop.permute.xlu0 %961 }
 0x284   : > { %931 = vbcast.lane.b32.xlu1 %v925_v17, 264  ;;  %927 = vbcast.lane.b32.xlu0 %v925_v17, 256  ;;  %v979_v29 = vmul.f32 %v975_v23, %v962_v21 }
 0x288   : > { %938 = vbcast.lane.b32.xlu1 %v936_v18, 256  ;;  %942 = vbcast.lane.b32.xlu0 %v936_v18, 264 }
 0x28c   : > { %968 = vbcast.lane.b32.xlu1 %v966_v13, 256  ;;  %972 = vbcast.lane.b32.xlu0 %v966_v13, 264 }
 0x2f6   : > { %v932_v26 = vpop.permute.xlu1 %931  ;;  %v928_v27 = vpop.permute.xlu0 %927 }
 0x2f7   : > { %v949_v30 = vmul.f32 %v945_v24, %v932_v26  ;;  %v948_v31 = vmul.f32 %v944_v25, %v928_v27 }
 0x2f9   : > { %v983_v32 = vadd.f32 %v979_v29, %v949_v30  ;;  %v982_v33 = vadd.f32 %v978_v28, %v948_v31 }
 0x2fa   : > { %v939_v35 = vpop.permute.xlu1 %938  ;;  %v943_v36 = vpop.permute.xlu0 %942 }
 0x2fb   : > { %987 = vst.msk [vmem:[%s1742_s6 + $0x8] sm:$0xff] %vm491_vm2, %v983_v32  ;;  %v1325_v37 = vpack.c.bf16 %v983_v32, %v983_v32  ;;  %986 = vst.msk [vmem:[%s1742_s6] sm:$0xff] %vm491_vm2, %v982_v33  ;;  %v1324_v38 = vpack.c.bf16 %v982_v33, %v982_v33 }
 0x2fd   : > { %1008 = vst.msk [vmem:[%s1744_s8 + $0x4] sm:$0xf] %vm1006_vm9, %v1325_v37  ;;  %1007 = vst.msk [vmem:[%s1744_s8] sm:$0xf] %vm1006_vm9, %v1324_v38 }
 0x2fe   : > { %v969_v43 = vpop.permute.xlu1 %968  ;;  %v973_v44 = vpop.permute.xlu0 %972 }
 0x2ff   : > { %v980_v46 = vmul.f32 %v976_v41, %v969_v43  ;;  %v981_v34 = vmul.f32 %v977_v42, %v973_v44 }
 0x302   : > { %v946_v39 = vld [vmem:[%s1737_s1 + $0x10] sm:$0xff]  ;;  %v947_v40 = vld [vmem:[%s1737_s1 + $0x18] sm:$0xff] }
 0x303   : > { %v950_v45 = vmul.f32 %v946_v39, %v939_v35  ;;  %v951_v20 = vmul.f32 %v947_v40, %v943_v36 }
 0x305   : > { %v984_v47 = vadd.f32 %v980_v46, %v950_v45  ;;  %v985_v48 = vadd.f32 %v981_v34, %v951_v20 }
 0x307   : > { %988 = vst.msk [vmem:[%s1742_s6 + $0x10] sm:$0xff] %vm491_vm2, %v984_v47  ;;  %v1326_v49 = vpack.c.bf16 %v984_v47, %v984_v47  ;;  %989 = vst.msk [vmem:[%s1742_s6 + $0x18] sm:$0xff] %vm491_vm2, %v985_v48  ;;  %v1327_v50 = vpack.c.bf16 %v985_v48, %v985_v48 }
 0x309   : > { %1009 = vst.msk [vmem:[%s1744_s8 + $0x8] sm:$0xf] %vm1006_vm9, %v1326_v49  ;;  %1010 = vst.msk [vmem:[%s1744_s8 + $0xc] sm:$0xf] %vm1006_vm9, %v1327_v50 }
 0x30a PF: > { %1031 = sbr.rel (!%p1590_p6) target bundleno = 785 (0x311), region = 98  ;;  %s1328_s27 = sshll.u32 (%p1590_p6), %s1492_s29, 3  ;;  %v1051_v51 = vld [vmem:[%s1606_s11] sm:$0xff] (%p1590_p6)   ;;  %v1055_v52 = vld [vmem:[%s1606_s11 + $0x8] sm:$0xff] (%p1590_p6)  }
 0x30b   : > { %s1035_s16 = scalar_lea.vmem (%p1590_p6), %s1743_s7, %s1328_s27 }
 0x30c   : > { %1052 = vst [vmem:[%s1035_s16] sm:$0xff] (%p1590_p6), %v1051_v51   ;;  %1056 = vst [vmem:[%s1035_s16 + $0x20] sm:$0xff] (%p1590_p6), %v1055_v52  }
 0x311 PF: > { %s19_s9 = sadd.s32 1, %s1500_s9   ;;  %s1746_s27 = smov %s1488_s28 }
 0x312   : > { %p16_p13 = scmp.ge.s32.totalorder %s19_s9, 6   ;;  %s1747_s28 = smov %s1595_s15 }
 0x313   : > { %s1748_s29 = smov %s1496_s30  ;;  %s1749_s30 = smov %s1751_s10 }
 0x314   :  { %18 = sbr.rel (!%p16_p13) target bundleno = 3 (0x3), region = 205 }

</bundles_post_ra>
